<compile_context>
chip_gen: v7x
topology: tpu7x:2x2x1
jax: 0.10.0
libtpu: 0.0.40
codegen_flags: <defaults>
</compile_context>

<pallas_src>
import math
import jax
import jax.numpy as jnp
from jax.experimental import pallas as pl
from jax.experimental.pallas import tpu as pltpu

# ----------------------------- config (small) ------------------------------
VOCAB = 100
HIDDEN = 128          # stands in for 768
N_LAYERS = 4          # must be >= 3 so hidden_states[-3] is an encoder output
N_HEADS = 2
HEAD_DIM = HIDDEN // N_HEADS
INTER = 4 * HIDDEN
LN_EPS = 1e-12
LEAKY_SLOPE = 0.01    # nn.LeakyReLU() default
SQRT_2_OVER_PI = math.sqrt(2.0 / math.pi)
LOGIT_PAD = 128       # lane-dense padded QA-head output width (real logits = 2)
VMEM_LIMIT = 48 * 1024 * 1024

assert N_LAYERS >= 3


def _round_up(x, m):
    return (x + m - 1) // m * m


# --------------------------- in-kernel helpers ------------------------------
def _ln(x, g, b):
    """LayerNorm over last axis, f32 math."""
    mu = jnp.mean(x, axis=-1, keepdims=True)
    xc = x - mu
    var = jnp.mean(xc * xc, axis=-1, keepdims=True)
    return xc * jax.lax.rsqrt(var + LN_EPS) * g + b


def _gelu(x):
    # tanh approximation of GELU (HF 'gelu' is erf-based; close but not
    # bit-identical — synthetic weights here, so acceptable).
    return 0.5 * x * (1.0 + jnp.tanh(SQRT_2_OVER_PI * (x + 0.044715 * x * x * x)))


# --------------------------- embedding LayerNorm -----------------------------
def _layernorm_kernel(x_ref, g_ref, b_ref, o_ref):
    x = x_ref[...].astype(jnp.float32)
    o_ref[...] = _ln(x, g_ref[...], b_ref[...]).astype(o_ref.dtype)


def layernorm_pallas(x2d, gamma, beta, tm=256):
    M, H = x2d.shape
    tm = min(tm, _round_up(M, 8))          # big tiles; pad rows, never tm=M blow-up
    Mp = _round_up(M, tm)
    if Mp != M:
        x2d = jnp.pad(x2d, ((0, Mp - M), (0, 0)))
    out = pl.pallas_call(
        _layernorm_kernel,
        out_shape=jax.ShapeDtypeStruct((Mp, H), jnp.bfloat16),
        grid=(Mp // tm,),
        in_specs=[
            pl.BlockSpec((tm, H), lambda i: (i, 0)),
            pl.BlockSpec((1, H), lambda i: (0, 0)),
            pl.BlockSpec((1, H), lambda i: (0, 0)),
        ],
        out_specs=pl.BlockSpec((tm, H), lambda i: (i, 0)),
        compiler_params=pltpu.CompilerParams(dimension_semantics=("parallel",)),
    )(x2d, gamma, beta)
    return out[:M]


# ----------------------- fused encoder stack (all layers) --------------------
def _encoder_stack_kernel(h_ref, mask_ref,
                          wqkv_ref, bqkv_ref, wo_ref, bo_ref,
                          ln1g_ref, ln1b_ref, w1_ref, b1_ref, w2_ref, b2_ref,
                          ln2g_ref, ln2b_ref,
                          hlast_ref, hm3_ref, act_ref):
    """Grid = (batch, layer). Activations persist in VMEM scratch across layers."""
    l = pl.program_id(1)
    S = act_ref.shape[0]
    H = HIDDEN
    HD = HEAD_DIM

    # load this batch element's activations into the persistent scratch once
    @pl.when(l == 0)
    def _():
        act_ref[...] = h_ref[0].astype(jnp.float32)

    x = act_ref[...]                                   # (S, H) f32
    x16 = x.astype(jnp.bfloat16)

    # ---- fused QKV projection: one (S,H)x(H,3H) MXU matmul ----
    qkv = jnp.dot(x16, wqkv_ref[0], preferred_element_type=jnp.float32) + bqkv_ref[0]
    qkv16 = qkv.astype(jnp.bfloat16)

    # Batched-head score / softmax stream: heads stacked on a leading axis
    # (no lane-dim concatenate, single mask add, single softmax).
    q_all = jnp.stack([qkv16[:, 0 * H + h * HD: 0 * H + (h + 1) * HD]
                       for h in range(N_HEADS)])       # (NH, S, HD)
    k_all = jnp.stack([qkv16[:, 1 * H + h * HD: 1 * H + (h + 1) * HD]
                       for h in range(N_HEADS)])       # (NH, S, HD)

    scale = 1.0 / math.sqrt(HD)
    mask = mask_ref[0]                                 # (1, S) additive bias, f32
    s = jnp.einsum("hqd,hkd->hqk", q_all, k_all,
                   preferred_element_type=jnp.float32) * scale
    s = s + mask                                       # broadcast over (NH, S, S)
    s = s - jnp.max(s, axis=-1, keepdims=True)
    p = jnp.exp(s)
    p = p * pl.reciprocal(jnp.sum(p, axis=-1, keepdims=True), approx=True)
    p16 = p.astype(jnp.bfloat16)

    # Per-head PV + output projection, accumulated into a full-width (S,H) f32
    # value (replaces ctx list + concatenate).  All MXU work.
    wo = wo_ref[0]                                     # (H, H) bf16
    acc = jnp.zeros((S, H), jnp.float32)
    for h in range(N_HEADS):
        vh = qkv16[:, 2 * H + h * HD: 2 * H + (h + 1) * HD]          # (S, HD)
        ctx_h = jnp.dot(p16[h], vh, preferred_element_type=jnp.float32)
        acc = acc + jnp.dot(ctx_h.astype(jnp.bfloat16),
                            wo[h * HD:(h + 1) * HD, :],
                            preferred_element_type=jnp.float32)
    attn_out = acc + bo_ref[0]

    # ---- residual + LayerNorm 1 (f32 epilogue) ----
    h1 = _ln(attn_out + x, ln1g_ref[0], ln1b_ref[0])

    # ---- fused FFN: GELU(h1 @ W1 + b1) @ W2 + b2, intermediate stays in VMEM ----
    f = jnp.dot(h1.astype(jnp.bfloat16), w1_ref[0],
                preferred_element_type=jnp.float32) + b1_ref[0]
    f = _gelu(f)
    f = jnp.dot(f.astype(jnp.bfloat16), w2_ref[0],
                preferred_element_type=jnp.float32) + b2_ref[0]

    # ---- residual + LayerNorm 2, write back to persistent activation ----
    new_h = _ln(f + h1, ln2g_ref[0], ln2b_ref[0])
    act_ref[...] = new_h

    # hidden_states[-3] = output of layer index N_LAYERS-3 (0-based)
    @pl.when(l == N_LAYERS - 3)
    def _():
        hm3_ref[0] = new_h.astype(hm3_ref.dtype)

    # hidden_states[-1] = output of last layer
    @pl.when(l == N_LAYERS - 1)
    def _():
        hlast_ref[0] = new_h.astype(hlast_ref.dtype)


def encoder_stack_pallas(p, h3d, mask_bias):
    B, S, H = h3d.shape
    L = N_LAYERS
    wmap = lambda b, l: (l, 0, 0)     # weights indexed by layer -> pipelined prefetch
    amap = lambda b, l: (b, 0, 0)     # activations / outputs indexed by batch only

    # advisory cost estimate so XLA schedules glue ops around the long call
    flops = 2 * B * L * S * (3 * H * H + H * H + 2 * S * H + 2 * H * INTER)
    transcendentals = B * L * (N_HEADS * S * S + S * INTER)
    bytes_accessed = (
        L * (3 * H * H + H * H + 2 * H * INTER) * 2        # bf16 weights
        + L * (4 * H + 3 * H + INTER + 4 * H) * 4           # f32 biases / LN params
        + B * S * H * 2                                      # bf16 activations in
        + 2 * B * S * H * 2                                  # two bf16 outputs
        + B * S * 4)                                         # mask bias

    out_shape = (jax.ShapeDtypeStruct((B, S, H), jnp.bfloat16),   # hidden_states[-1]
                 jax.ShapeDtypeStruct((B, S, H), jnp.bfloat16))   # hidden_states[-3]

    return pl.pallas_call(
        _encoder_stack_kernel,
        out_shape=out_shape,
        grid=(B, L),
        in_specs=[
            pl.BlockSpec((1, S, H), amap),          # activations (bf16)
            pl.BlockSpec((1, 1, S), amap),          # mask bias
            pl.BlockSpec((1, H, 3 * H), wmap),      # wqkv (bf16)
            pl.BlockSpec((1, 1, 3 * H), wmap),      # bqkv
            pl.BlockSpec((1, H, H), wmap),          # wo (bf16)
            pl.BlockSpec((1, 1, H), wmap),          # bo
            pl.BlockSpec((1, 1, H), wmap),          # ln1_g
            pl.BlockSpec((1, 1, H), wmap),          # ln1_b
            pl.BlockSpec((1, H, INTER), wmap),      # w1 (bf16)
            pl.BlockSpec((1, 1, INTER), wmap),      # b1
            pl.BlockSpec((1, INTER, H), wmap),      # w2 (bf16)
            pl.BlockSpec((1, 1, H), wmap),          # b2
            pl.BlockSpec((1, 1, H), wmap),          # ln2_g
            pl.BlockSpec((1, 1, H), wmap),          # ln2_b
        ],
        out_specs=(pl.BlockSpec((1, S, H), amap),
                   pl.BlockSpec((1, S, H), amap)),
        scratch_shapes=[pltpu.VMEM((S, H), jnp.float32)],   # persistent activations
        compiler_params=pltpu.CompilerParams(
            dimension_semantics=("parallel", "arbitrary"),
            vmem_limit_bytes=VMEM_LIMIT),
        cost_estimate=pl.CostEstimate(flops=flops,
                                      transcendentals=transcendentals,
                                      bytes_accessed=bytes_accessed),
    )(h3d, mask_bias,
      p["wqkv"], p["bqkv"], p["wo"], p["bo"], p["ln1_g"], p["ln1_b"],
      p["w1"], p["b1"], p["w2"], p["b2"], p["ln2_g"], p["ln2_b"])


# --------------------------------- QA head -----------------------------------
def _qa_head_kernel(a_ref, b_ref, w1a_ref, w1b_ref, b1_ref, w2_ref, b2_ref, o_ref):
    # cat(a, b) @ W1 == a @ W1[:H] + b @ W1[H:]   (concat eliminated)
    h = (jnp.dot(a_ref[...], w1a_ref[...], preferred_element_type=jnp.float32)
         + jnp.dot(b_ref[...], w1b_ref[...], preferred_element_type=jnp.float32)
         + b1_ref[...])
    h = jnp.where(h > 0, h, LEAKY_SLOPE * h)                  # LeakyReLU
    y = jnp.dot(h.astype(jnp.bfloat16), w2_ref[...],
                preferred_element_type=jnp.float32) + b2_ref[...]
    o_ref[...] = y                                            # lane-dense (tm,128)


def qa_head_pallas(h_last, h_m3, params, tm=256):
    M, H = h_last.shape
    tm = min(tm, _round_up(M, 8))          # big M tiles; pad rows, never tm=M
    Mp = _round_up(M, tm)
    if Mp != M:
        pad = ((0, Mp - M), (0, 0))
        h_last = jnp.pad(h_last, pad)
        h_m3 = jnp.pad(h_m3, pad)
    H2 = 2 * H
    out = pl.pallas_call(
        _qa_head_kernel,
        out_shape=jax.ShapeDtypeStruct((Mp, LOGIT_PAD), jnp.float32),
        grid=(Mp // tm,),
        in_specs=[
            pl.BlockSpec((tm, H), lambda i: (i, 0)),
            pl.BlockSpec((tm, H), lambda i: (i, 0)),
            pl.BlockSpec((H, H2), lambda i: (0, 0)),
            pl.BlockSpec((H, H2), lambda i: (0, 0)),
            pl.BlockSpec((1, H2), lambda i: (0, 0)),
            pl.BlockSpec((H2, LOGIT_PAD), lambda i: (0, 0)),
            pl.BlockSpec((1, LOGIT_PAD), lambda i: (0, 0)),
        ],
        out_specs=pl.BlockSpec((tm, LOGIT_PAD), lambda i: (i, 0)),
        compiler_params=pltpu.CompilerParams(
            dimension_semantics=("parallel",),
            vmem_limit_bytes=VMEM_LIMIT),
    )(h_last, h_m3, params["l1_w_a"], params["l1_w_b"], params["l1_b"],
      params["l2_w_pad"], params["l2_b_pad"])
    return out[:M, :2]          # real logits; padded rows / lanes discarded


# ------------------------------ parameters ----------------------------------
def _normal(key, shape, scale=0.02, dtype=jnp.float32):
    return (scale * jax.random.normal(key, shape, dtype=jnp.float32)).astype(dtype)


def init_params(key, max_seq=64):
    H = HIDDEN
    L = N_LAYERS
    keys = jax.random.split(key, 8 + 6 * L)
    it = iter(keys)
    params = {
        "word_emb": _normal(next(it), (VOCAB, H)),
        "pos_emb": _normal(next(it), (max_seq, H)),
        "type_emb": _normal(next(it), (2, H)),
        "emb_ln_g": jnp.ones((1, H), jnp.float32),
        "emb_ln_b": jnp.zeros((1, H), jnp.float32),
    }
    # QA head: l1 = Linear(2H, 2H) stored as two (H, 2H) halves (bf16),
    #          l2 = Linear(2H, 2) stored lane-dense padded to LOGIT_PAD columns.
    # NOTE: weights are (in_features, out_features), i.e. nn.Linear.weight.T.
    l1_w = _normal(next(it), (2 * H, 2 * H), dtype=jnp.bfloat16)
    l2_w = _normal(next(it), (2 * H, 2))
    params["l1_w_a"] = l1_w[:H]
    params["l1_w_b"] = l1_w[H:]
    params["l1_b"] = jnp.zeros((1, 2 * H), jnp.float32)
    params["l2_w_pad"] = (jnp.zeros((2 * H, LOGIT_PAD), jnp.bfloat16)
                          .at[:, :2].set(l2_w.astype(jnp.bfloat16)))
    params["l2_b_pad"] = jnp.zeros((1, LOGIT_PAD), jnp.float32)

    # Encoder weights stacked along a leading layer axis for the fused call.
    wqkv, wo, w1, w2 = [], [], [], []
    for _ in range(L):
        wq = _normal(next(it), (H, H))
        wk = _normal(next(it), (H, H))
        wv = _normal(next(it), (H, H))
        wqkv.append(jnp.concatenate([wq, wk, wv], axis=1).astype(jnp.bfloat16))
        wo.append(_normal(next(it), (H, H), dtype=jnp.bfloat16))
        w1.append(_normal(next(it), (H, INTER), dtype=jnp.bfloat16))
        w2.append(_normal(next(it), (INTER, H), dtype=jnp.bfloat16))
    params["wqkv"] = jnp.stack(wqkv)                       # (L, H, 3H) bf16
    params["bqkv"] = jnp.zeros((L, 1, 3 * H), jnp.float32)
    params["wo"] = jnp.stack(wo)                           # (L, H, H) bf16
    params["bo"] = jnp.zeros((L, 1, H), jnp.float32)
    params["ln1_g"] = jnp.ones((L, 1, H), jnp.float32)
    params["ln1_b"] = jnp.zeros((L, 1, H), jnp.float32)
    params["w1"] = jnp.stack(w1)                           # (L, H, INTER) bf16
    params["b1"] = jnp.zeros((L, 1, INTER), jnp.float32)
    params["w2"] = jnp.stack(w2)                           # (L, INTER, H) bf16
    params["b2"] = jnp.zeros((L, 1, H), jnp.float32)
    params["ln2_g"] = jnp.ones((L, 1, H), jnp.float32)
    params["ln2_b"] = jnp.zeros((L, 1, H), jnp.float32)
    return params


# ------------------------------ model forward -------------------------------
def qa_model_forward(params, input_ids, attention_mask, token_type_ids):
    B, S = input_ids.shape
    H = HIDDEN
    # TODO(synk): embedding table gathers stay in plain JAX (a manual DMA-gather
    # kernel buys nothing at these sizes).
    emb = (params["word_emb"][input_ids]
           + params["pos_emb"][jnp.arange(S)][None, :, :]
           + params["type_emb"][token_type_ids])
    h = layernorm_pallas(emb.reshape(B * S, H),
                         params["emb_ln_g"], params["emb_ln_b"])      # bf16
    h = h.reshape(B, S, H)

    mask_bias = ((1.0 - attention_mask.astype(jnp.float32)) * -10000.0).reshape(B, 1, S)

    # All encoder layers in one fused pallas_call; returns hidden_states[-1], [-3].
    h_last, h_m3 = encoder_stack_pallas(params, h, mask_bias)

    # QA head on cat(h[-1], h[-3]) — concat folded into the kernel via split W1.
    logits = qa_head_pallas(h_last.reshape(B * S, H),
                            h_m3.reshape(B * S, H), params)           # (B*S, 2)
    logits = logits.reshape(B, S, 2)
    start_logits = logits[..., 0]   # split(1, dim=-1) + squeeze(-1)
    end_logits = logits[..., 1]
    return start_logits, end_logits


# ----------------------------------- main ------------------------------------
if __name__ == "__main__":
    key = jax.random.PRNGKey(0)
    k_param, k_ids = jax.random.split(key)
    params = init_params(k_param)

    B, S = 2, 8
    input_ids = jax.random.randint(k_ids, (B, S), 0, VOCAB, dtype=jnp.int32)
    attention_mask = jnp.ones((B, S), dtype=jnp.int32).at[1, S - 2:].set(0)
    token_type_ids = jnp.concatenate(
        [jnp.zeros((B, S // 2), jnp.int32), jnp.ones((B, S - S // 2), jnp.int32)],
        axis=1)

    fwd = jax.jit(qa_model_forward)
    start_logits, end_logits = fwd(params, input_ids, attention_mask, token_type_ids)
    jax.block_until_ready((start_logits, end_logits))

    assert start_logits.shape == (B, S) and end_logits.shape == (B, S)
    assert bool(jnp.all(jnp.isfinite(start_logits)))
    assert bool(jnp.all(jnp.isfinite(end_logits)))
    print("KERNEL_OK")
</pallas_src>

<mosaic_0001>
module attributes {stable_mosaic.version = 11 : i64} {
  func.func @_layernorm_kernel(%arg0: i32, %arg1: memref<16x128xf32, #tpu.memory_space<vmem>>, %arg2: memref<1x128xf32, #tpu.memory_space<vmem>>, %arg3: memref<1x128xf32, #tpu.memory_space<vmem>>, %arg4: memref<16x128xbf16, #tpu.memory_space<vmem>>) attributes {dimension_semantics = [#tpu.dimension_semantics<parallel>], iteration_bounds = array<i64: 1>, scalar_prefetch = 0 : i64, scratch_operands = 0 : i64, tpu.core_type = #tpu.core_type<tc>, window_params = [{transform_indices = @transform_0, window_bounds = array<i64: 16, 128>}, {pipeline_mode = #tpu.pipeline_mode<synchronous>, transform_indices = @transform_1, window_bounds = array<i64: 1, 128>}, {pipeline_mode = #tpu.pipeline_mode<synchronous>, transform_indices = @transform_2, window_bounds = array<i64: 1, 128>}, {transform_indices = @transform_3, window_bounds = array<i64: 16, 128>}]} {
    %c0 = arith.constant 0 : index
    %c0_0 = arith.constant 0 : index
    %0 = vector.load %arg1[%c0, %c0_0] : memref<16x128xf32, #tpu.memory_space<vmem>>, vector<16x128xf32>
    %c0_1 = arith.constant 0 : index
    %c0_2 = arith.constant 0 : index
    %1 = vector.load %arg2[%c0_1, %c0_2] : memref<1x128xf32, #tpu.memory_space<vmem>>, vector<1x128xf32>
    %c0_3 = arith.constant 0 : index
    %c0_4 = arith.constant 0 : index
    %2 = vector.load %arg3[%c0_3, %c0_4] : memref<1x128xf32, #tpu.memory_space<vmem>>, vector<1x128xf32>
    %cst = arith.constant dense<0.000000e+00> : vector<16xf32>
    %3 = vector.multi_reduction <add>, %0, %cst [1] : vector<16x128xf32> to vector<16xf32>
    %4 = vector.shape_cast %3 : vector<16xf32> to vector<16x1xf32>
    %cst_5 = arith.constant 1.280000e+02 : f32
    %5 = vector.broadcast %cst_5 : f32 to vector<16x1xf32>
    %6 = arith.divf %4, %5 : vector<16x1xf32>
    %7 = vector.broadcast %6 : vector<16x1xf32> to vector<16x128xf32>
    %8 = arith.subf %0, %7 : vector<16x128xf32>
    %9 = arith.mulf %8, %8 : vector<16x128xf32>
    %cst_6 = arith.constant dense<0.000000e+00> : vector<16xf32>
    %10 = vector.multi_reduction <add>, %9, %cst_6 [1] : vector<16x128xf32> to vector<16xf32>
    %11 = vector.shape_cast %10 : vector<16xf32> to vector<16x1xf32>
    %cst_7 = arith.constant 1.280000e+02 : f32
    %12 = vector.broadcast %cst_7 : f32 to vector<16x1xf32>
    %13 = arith.divf %11, %12 : vector<16x1xf32>
    %cst_8 = arith.constant 9.99999996E-13 : f32
    %14 = vector.broadcast %cst_8 : f32 to vector<16x1xf32>
    %15 = arith.addf %13, %14 : vector<16x1xf32>
    %16 = math.rsqrt %15 : vector<16x1xf32>
    %17 = vector.broadcast %16 : vector<16x1xf32> to vector<16x128xf32>
    %18 = arith.mulf %8, %17 : vector<16x128xf32>
    %19 = vector.broadcast %1 : vector<1x128xf32> to vector<16x128xf32>
    %20 = arith.mulf %18, %19 : vector<16x128xf32>
    %21 = vector.broadcast %2 : vector<1x128xf32> to vector<16x128xf32>
    %22 = arith.addf %20, %21 : vector<16x128xf32>
    %23 = arith.truncf %22 : vector<16x128xf32> to vector<16x128xbf16>
    %c0_9 = arith.constant 0 : index
    %c0_10 = arith.constant 0 : index
    %24 = vector.load %arg4[%c0_9, %c0_10] : memref<16x128xbf16, #tpu.memory_space<vmem>>, vector<16x128xbf16>
    tpu.vector_store %arg4[%c0_9, %c0_10], %23 {strides = array<i32>} : memref<16x128xbf16, #tpu.memory_space<vmem>>, vector<16x128xbf16>,
    return
  }
  func.func @transform_0(%arg0: i32) -> (i32, i32) {
    %c0_i32 = arith.constant 0 : i32
    %c0_i32_0 = arith.constant 0 : i32
    return %arg0, %c0_i32 : i32, i32
  }
  func.func @transform_1(%arg0: i32) -> (i32, i32) {
    %c0_i32 = arith.constant 0 : i32
    %c0_i32_0 = arith.constant 0 : i32
    %c0_i32_1 = arith.constant 0 : i32
    return %c0_i32, %c0_i32_0 : i32, i32
  }
  func.func @transform_2(%arg0: i32) -> (i32, i32) {
    %c0_i32 = arith.constant 0 : i32
    %c0_i32_0 = arith.constant 0 : i32
    %c0_i32_1 = arith.constant 0 : i32
    return %c0_i32, %c0_i32_0 : i32, i32
  }
  func.func @transform_3(%arg0: i32) -> (i32, i32) {
    %c0_i32 = arith.constant 0 : i32
    %c0_i32_0 = arith.constant 0 : i32
    return %arg0, %c0_i32 : i32, i32
  }
}

module attributes {stable_mosaic.version = 11 : i64} {
  func.func @_encoder_stack_kernel(%arg0: i32, %arg1: i32, %arg2: memref<1x8x128xbf16, #tpu.memory_space<vmem>>, %arg3: memref<1x1x8xf32, #tpu.memory_space<vmem>>, %arg4: memref<1x128x384xbf16, #tpu.memory_space<vmem>>, %arg5: memref<1x1x384xf32, #tpu.memory_space<vmem>>, %arg6: memref<1x128x128xbf16, #tpu.memory_space<vmem>>, %arg7: memref<1x1x128xf32, #tpu.memory_space<vmem>>, %arg8: memref<1x1x128xf32, #tpu.memory_space<vmem>>, %arg9: memref<1x1x128xf32, #tpu.memory_space<vmem>>, %arg10: memref<1x128x512xbf16, #tpu.memory_space<vmem>>, %arg11: memref<1x1x512xf32, #tpu.memory_space<vmem>>, %arg12: memref<1x512x128xbf16, #tpu.memory_space<vmem>>, %arg13: memref<1x1x128xf32, #tpu.memory_space<vmem>>, %arg14: memref<1x1x128xf32, #tpu.memory_space<vmem>>, %arg15: memref<1x1x128xf32, #tpu.memory_space<vmem>>, %arg16: memref<1x8x128xbf16, #tpu.memory_space<vmem>>, %arg17: memref<1x8x128xbf16, #tpu.memory_space<vmem>>, %arg18: memref<8x128xf32, #tpu.memory_space<vmem>>) attributes {dimension_semantics = [#tpu.dimension_semantics<parallel>, #tpu.dimension_semantics<arbitrary>], iteration_bounds = array<i64: 2, 4>, scalar_prefetch = 0 : i64, scratch_operands = 1 : i64, tpu.core_type = #tpu.core_type<tc>, window_params = [{transform_indices = @transform_0, window_bounds = array<i64: 1, 8, 128>}, {transform_indices = @transform_1, window_bounds = array<i64: 1, 1, 8>}, {transform_indices = @transform_2, window_bounds = array<i64: 1, 128, 384>}, {transform_indices = @transform_3, window_bounds = array<i64: 1, 1, 384>}, {transform_indices = @transform_4, window_bounds = array<i64: 1, 128, 128>}, {transform_indices = @transform_5, window_bounds = array<i64: 1, 1, 128>}, {transform_indices = @transform_6, window_bounds = array<i64: 1, 1, 128>}, {transform_indices = @transform_7, window_bounds = array<i64: 1, 1, 128>}, {transform_indices = @transform_8, window_bounds = array<i64: 1, 128, 512>}, {transform_indices = @transform_9, window_bounds = array<i64: 1, 1, 512>}, {transform_indices = @transform_10, window_bounds = array<i64: 1, 512, 128>}, {transform_indices = @transform_11, window_bounds = array<i64: 1, 1, 128>}, {transform_indices = @transform_12, window_bounds = array<i64: 1, 1, 128>}, {transform_indices = @transform_13, window_bounds = array<i64: 1, 1, 128>}, {transform_indices = @transform_14, window_bounds = array<i64: 1, 8, 128>}, {transform_indices = @transform_15, window_bounds = array<i64: 1, 8, 128>}]} {
    %c0_i32 = arith.constant 0 : i32
    %0 = arith.cmpi eq, %arg1, %c0_i32 : i32
    %1 = arith.extui %0 : i1 to i32
    %c0_i32_0 = arith.constant 0 : i32
    %2 = arith.cmpi ne, %1, %c0_i32_0 : i32
    scf.if %2 {
      %c0_70 = arith.constant 0 : index
      %c0_71 = arith.constant 0 : index
      %c0_72 = arith.constant 0 : index
      %151 = vector.load %arg2[%c0_70, %c0_71, %c0_72] : memref<1x8x128xbf16, #tpu.memory_space<vmem>>, vector<1x8x128xbf16>
      %152 = vector.shape_cast %151 : vector<1x8x128xbf16> to vector<8x128xbf16>
      %153 = arith.extf %152 : vector<8x128xbf16> to vector<8x128xf32>
      %c0_73 = arith.constant 0 : index
      %c0_74 = arith.constant 0 : index
      %154 = vector.load %arg18[%c0_73, %c0_74] : memref<8x128xf32, #tpu.memory_space<vmem>>, vector<8x128xf32>
      tpu.vector_store %arg18[%c0_73, %c0_74], %153 {strides = array<i32>} : memref<8x128xf32, #tpu.memory_space<vmem>>, vector<8x128xf32>,
    } else {
    }
    %c0 = arith.constant 0 : index
    %c0_1 = arith.constant 0 : index
    %3 = vector.load %arg18[%c0, %c0_1] : memref<8x128xf32, #tpu.memory_space<vmem>>, vector<8x128xf32>
    %4 = arith.truncf %3 : vector<8x128xf32> to vector<8x128xbf16>
    %c0_2 = arith.constant 0 : index
    %c0_3 = arith.constant 0 : index
    %c0_4 = arith.constant 0 : index
    %5 = vector.load %arg4[%c0_2, %c0_3, %c0_4] : memref<1x128x384xbf16, #tpu.memory_space<vmem>>, vector<1x128x384xbf16>
    %6 = vector.shape_cast %5 : vector<1x128x384xbf16> to vector<128x384xbf16>
    %cst = arith.constant dense<0.000000e+00> : vector<8x384xf32>
    %7 = tpu.matmul %4, %6, %cst {dimension_numbers = #tpu.dot_dimension_numbers<[1], [0], [0], [1], [0, 0, 1, 1], [], []>} : vector<8x128xbf16>, vector<128x384xbf16>, vector<8x384xf32> -> vector<8x384xf32>
    %c0_5 = arith.constant 0 : index
    %c0_6 = arith.constant 0 : index
    %c0_7 = arith.constant 0 : index
    %8 = vector.load %arg5[%c0_5, %c0_6, %c0_7] : memref<1x1x384xf32, #tpu.memory_space<vmem>>, vector<1x1x384xf32>
    %9 = vector.shape_cast %8 : vector<1x1x384xf32> to vector<1x384xf32>
    %10 = vector.broadcast %9 : vector<1x384xf32> to vector<8x384xf32>
    %11 = arith.addf %7, %10 : vector<8x384xf32>
    %12 = arith.truncf %11 : vector<8x384xf32> to vector<8x384xbf16>
    %13 = vector.extract_strided_slice %12 {offsets = [0, 0], sizes = [8, 64], strides = [1, 1]} : vector<8x384xbf16> to vector<8x64xbf16>
    %14 = vector.extract_strided_slice %12 {offsets = [0, 64], sizes = [8, 64], strides = [1, 1]} : vector<8x384xbf16> to vector<8x64xbf16>
    %15 = vector.shape_cast %13 : vector<8x64xbf16> to vector<1x8x64xbf16>
    %16 = vector.shape_cast %14 : vector<8x64xbf16> to vector<1x8x64xbf16>
    %17 = tpu.concatenate %15, %16 in 0 : vector<1x8x64xbf16>, vector<1x8x64xbf16> -> vector<2x8x64xbf16>
    %18 = vector.extract_strided_slice %12 {offsets = [0, 128], sizes = [8, 64], strides = [1, 1]} : vector<8x384xbf16> to vector<8x64xbf16>
    %19 = vector.extract_strided_slice %12 {offsets = [0, 192], sizes = [8, 64], strides = [1, 1]} : vector<8x384xbf16> to vector<8x64xbf16>
    %20 = vector.shape_cast %18 : vector<8x64xbf16> to vector<1x8x64xbf16>
    %21 = vector.shape_cast %19 : vector<8x64xbf16> to vector<1x8x64xbf16>
    %22 = tpu.concatenate %20, %21 in 0 : vector<1x8x64xbf16>, vector<1x8x64xbf16> -> vector<2x8x64xbf16>
    %c0_8 = arith.constant 0 : index
    %c0_9 = arith.constant 0 : index
    %c0_10 = arith.constant 0 : index
    %23 = vector.load %arg3[%c0_8, %c0_9, %c0_10] : memref<1x1x8xf32, #tpu.memory_space<vmem>>, vector<1x1x8xf32>
    %24 = vector.shape_cast %23 : vector<1x1x8xf32> to vector<1x8xf32>
    "tpu.trace_start"() <{level = 10 : i32, message = "hqd,hkd->hqk"}> : () -> ()
    %cst_11 = arith.constant dense<0.000000e+00> : vector<2x8x8xf32>
    %25 = tpu.matmul %17, %22, %cst_11 {dimension_numbers = #tpu.dot_dimension_numbers<[2], [2], [1], [1], [0, 0, 0, 1, 1, 1], [0], [0]>} : vector<2x8x64xbf16>, vector<2x8x64xbf16>, vector<2x8x8xf32> -> vector<2x8x8xf32>
    "tpu.trace_stop"() : () -> ()
    %cst_12 = arith.constant 1.250000e-01 : f32
    %26 = vector.broadcast %cst_12 : f32 to vector<2x8x8xf32>
    %27 = arith.mulf %25, %26 : vector<2x8x8xf32>
    %28 = vector.shape_cast %24 : vector<1x8xf32> to vector<1x1x8xf32>
    %29 = vector.broadcast %28 : vector<1x1x8xf32> to vector<2x8x8xf32>
    %30 = arith.addf %27, %29 : vector<2x8x8xf32>
    %cst_13 = arith.constant dense<0xFF800000> : vector<2x8xf32>
    %31 = vector.multi_reduction <maximumf>, %30, %cst_13 [2] : vector<2x8x8xf32> to vector<2x8xf32>
    %32 = vector.shape_cast %31 : vector<2x8xf32> to vector<2x8x1xf32>
    %33 = vector.broadcast %32 : vector<2x8x1xf32> to vector<2x8x8xf32>
    %34 = arith.subf %30, %33 : vector<2x8x8xf32>
    %35 = math.exp %34 : vector<2x8x8xf32>
    %cst_14 = arith.constant dense<0.000000e+00> : vector<2x8xf32>
    %36 = vector.multi_reduction <add>, %35, %cst_14 [2] : vector<2x8x8xf32> to vector<2x8xf32>
    %37 = vector.shape_cast %36 : vector<2x8xf32> to vector<2x8x1xf32>
    %38 = tpu.reciprocal %37 {approx = true} : vector<2x8x1xf32> -> vector<2x8x1xf32>
    %39 = vector.broadcast %38 : vector<2x8x1xf32> to vector<2x8x8xf32>
    %40 = arith.mulf %35, %39 : vector<2x8x8xf32>
    %41 = arith.truncf %40 : vector<2x8x8xf32> to vector<2x8x8xbf16>
    %c0_15 = arith.constant 0 : index
    %c0_16 = arith.constant 0 : index
    %c0_17 = arith.constant 0 : index
    %42 = vector.load %arg6[%c0_15, %c0_16, %c0_17] : memref<1x128x128xbf16, #tpu.memory_space<vmem>>, vector<1x128x128xbf16>
    %43 = vector.shape_cast %42 : vector<1x128x128xbf16> to vector<128x128xbf16>
    %cst_18 = arith.constant 0.000000e+00 : f32
    %44 = vector.broadcast %cst_18 : f32 to vector<8x128xf32>
    %45 = vector.extract_strided_slice %12 {offsets = [0, 256], sizes = [8, 64], strides = [1, 1]} : vector<8x384xbf16> to vector<8x64xbf16>
    %46 = vector.extract_strided_slice %41 {offsets = [0, 0, 0], sizes = [1, 8, 8], strides = [1, 1, 1]} : vector<2x8x8xbf16> to vector<1x8x8xbf16>
    %47 = vector.shape_cast %46 : vector<1x8x8xbf16> to vector<8x8xbf16>
    %cst_19 = arith.constant dense<0.000000e+00> : vector<8x64xf32>
    %48 = tpu.matmul %47, %45, %cst_19 {dimension_numbers = #tpu.dot_dimension_numbers<[1], [0], [0], [1], [0, 0, 1, 1], [], []>} : vector<8x8xbf16>, vector<8x64xbf16>, vector<8x64xf32> -> vector<8x64xf32>
    %49 = arith.truncf %48 : vector<8x64xf32> to vector<8x64xbf16>
    %50 = vector.extract_strided_slice %43 {offsets = [0, 0], sizes = [64, 128], strides = [1, 1]} : vector<128x128xbf16> to vector<64x128xbf16>
    %cst_20 = arith.constant dense<0.000000e+00> : vector<8x128xf32>
    %51 = tpu.matmul %49, %50, %cst_20 {dimension_numbers = #tpu.dot_dimension_numbers<[1], [0], [0], [1], [0, 0, 1, 1], [], []>} : vector<8x64xbf16>, vector<64x128xbf16>, vector<8x128xf32> -> vector<8x128xf32>
    %52 = arith.addf %44, %51 : vector<8x128xf32>
    %53 = vector.extract_strided_slice %12 {offsets = [0, 320], sizes = [8, 64], strides = [1, 1]} : vector<8x384xbf16> to vector<8x64xbf16>
    %54 = vector.extract_strided_slice %41 {offsets = [1, 0, 0], sizes = [1, 8, 8], strides = [1, 1, 1]} : vector<2x8x8xbf16> to vector<1x8x8xbf16>
    %55 = vector.shape_cast %54 : vector<1x8x8xbf16> to vector<8x8xbf16>
    %cst_21 = arith.constant dense<0.000000e+00> : vector<8x64xf32>
    %56 = tpu.matmul %55, %53, %cst_21 {dimension_numbers = #tpu.dot_dimension_numbers<[1], [0], [0], [1], [0, 0, 1, 1], [], []>} : vector<8x8xbf16>, vector<8x64xbf16>, vector<8x64xf32> -> vector<8x64xf32>
    %57 = arith.truncf %56 : vector<8x64xf32> to vector<8x64xbf16>
    %58 = vector.extract_strided_slice %43 {offsets = [64, 0], sizes = [64, 128], strides = [1, 1]} : vector<128x128xbf16> to vector<64x128xbf16>
    %cst_22 = arith.constant dense<0.000000e+00> : vector<8x128xf32>
    %59 = tpu.matmul %57, %58, %cst_22 {dimension_numbers = #tpu.dot_dimension_numbers<[1], [0], [0], [1], [0, 0, 1, 1], [], []>} : vector<8x64xbf16>, vector<64x128xbf16>, vector<8x128xf32> -> vector<8x128xf32>
    %60 = arith.addf %52, %59 : vector<8x128xf32>
    %c0_23 = arith.constant 0 : index
    %c0_24 = arith.constant 0 : index
    %c0_25 = arith.constant 0 : index
    %61 = vector.load %arg7[%c0_23, %c0_24, %c0_25] : memref<1x1x128xf32, #tpu.memory_space<vmem>>, vector<1x1x128xf32>
    %62 = vector.shape_cast %61 : vector<1x1x128xf32> to vector<1x128xf32>
    %63 = vector.broadcast %62 : vector<1x128xf32> to vector<8x128xf32>
    %64 = arith.addf %60, %63 : vector<8x128xf32>
    %65 = arith.addf %64, %3 : vector<8x128xf32>
    %c0_26 = arith.constant 0 : index
    %c0_27 = arith.constant 0 : index
    %c0_28 = arith.constant 0 : index
    %66 = vector.load %arg8[%c0_26, %c0_27, %c0_28] : memref<1x1x128xf32, #tpu.memory_space<vmem>>, vector<1x1x128xf32>
    %67 = vector.shape_cast %66 : vector<1x1x128xf32> to vector<1x128xf32>
    %c0_29 = arith.constant 0 : index
    %c0_30 = arith.constant 0 : index
    %c0_31 = arith.constant 0 : index
    %68 = vector.load %arg9[%c0_29, %c0_30, %c0_31] : memref<1x1x128xf32, #tpu.memory_space<vmem>>, vector<1x1x128xf32>
    %69 = vector.shape_cast %68 : vector<1x1x128xf32> to vector<1x128xf32>
    %cst_32 = arith.constant dense<0.000000e+00> : vector<8xf32>
    %70 = vector.multi_reduction <add>, %65, %cst_32 [1] : vector<8x128xf32> to vector<8xf32>
    %71 = vector.shape_cast %70 : vector<8xf32> to vector<8x1xf32>
    %cst_33 = arith.constant 1.280000e+02 : f32
    %72 = vector.broadcast %cst_33 : f32 to vector<8x1xf32>
    %73 = arith.divf %71, %72 : vector<8x1xf32>
    %74 = vector.broadcast %73 : vector<8x1xf32> to vector<8x128xf32>
    %75 = arith.subf %65, %74 : vector<8x128xf32>
    %76 = arith.mulf %75, %75 : vector<8x128xf32>
    %cst_34 = arith.constant dense<0.000000e+00> : vector<8xf32>
    %77 = vector.multi_reduction <add>, %76, %cst_34 [1] : vector<8x128xf32> to vector<8xf32>
    %78 = vector.shape_cast %77 : vector<8xf32> to vector<8x1xf32>
    %cst_35 = arith.constant 1.280000e+02 : f32
    %79 = vector.broadcast %cst_35 : f32 to vector<8x1xf32>
    %80 = arith.divf %78, %79 : vector<8x1xf32>
    %cst_36 = arith.constant 9.99999996E-13 : f32
    %81 = vector.broadcast %cst_36 : f32 to vector<8x1xf32>
    %82 = arith.addf %80, %81 : vector<8x1xf32>
    %83 = math.rsqrt %82 : vector<8x1xf32>
    %84 = vector.broadcast %83 : vector<8x1xf32> to vector<8x128xf32>
    %85 = arith.mulf %75, %84 : vector<8x128xf32>
    %86 = vector.broadcast %67 : vector<1x128xf32> to vector<8x128xf32>
    %87 = arith.mulf %85, %86 : vector<8x128xf32>
    %88 = vector.broadcast %69 : vector<1x128xf32> to vector<8x128xf32>
    %89 = arith.addf %87, %88 : vector<8x128xf32>
    %90 = arith.truncf %89 : vector<8x128xf32> to vector<8x128xbf16>
    %c0_37 = arith.constant 0 : index
    %c0_38 = arith.constant 0 : index
    %c0_39 = arith.constant 0 : index
    %91 = vector.load %arg10[%c0_37, %c0_38, %c0_39] : memref<1x128x512xbf16, #tpu.memory_space<vmem>>, vector<1x128x512xbf16>
    %92 = vector.shape_cast %91 : vector<1x128x512xbf16> to vector<128x512xbf16>
    %cst_40 = arith.constant dense<0.000000e+00> : vector<8x512xf32>
    %93 = tpu.matmul %90, %92, %cst_40 {dimension_numbers = #tpu.dot_dimension_numbers<[1], [0], [0], [1], [0, 0, 1, 1], [], []>} : vector<8x128xbf16>, vector<128x512xbf16>, vector<8x512xf32> -> vector<8x512xf32>
    %c0_41 = arith.constant 0 : index
    %c0_42 = arith.constant 0 : index
    %c0_43 = arith.constant 0 : index
    %94 = vector.load %arg11[%c0_41, %c0_42, %c0_43] : memref<1x1x512xf32, #tpu.memory_space<vmem>>, vector<1x1x512xf32>
    %95 = vector.shape_cast %94 : vector<1x1x512xf32> to vector<1x512xf32>
    %96 = vector.broadcast %95 : vector<1x512xf32> to vector<8x512xf32>
    %97 = arith.addf %93, %96 : vector<8x512xf32>
    %cst_44 = arith.constant 5.000000e-01 : f32
    %98 = vector.broadcast %cst_44 : f32 to vector<8x512xf32>
    %99 = arith.mulf %98, %97 : vector<8x512xf32>
    %cst_45 = arith.constant 4.471500e-02 : f32
    %100 = vector.broadcast %cst_45 : f32 to vector<8x512xf32>
    %101 = arith.mulf %100, %97 : vector<8x512xf32>
    %102 = arith.mulf %101, %97 : vector<8x512xf32>
    %103 = arith.mulf %102, %97 : vector<8x512xf32>
    %104 = arith.addf %97, %103 : vector<8x512xf32>
    %cst_46 = arith.constant 0.797884583 : f32
    %105 = vector.broadcast %cst_46 : f32 to vector<8x512xf32>
    %106 = arith.mulf %105, %104 : vector<8x512xf32>
    %107 = math.tanh %106 : vector<8x512xf32>
    %cst_47 = arith.constant 1.000000e+00 : f32
    %108 = vector.broadcast %cst_47 : f32 to vector<8x512xf32>
    %109 = arith.addf %108, %107 : vector<8x512xf32>
    %110 = arith.mulf %99, %109 : vector<8x512xf32>
    %111 = arith.truncf %110 : vector<8x512xf32> to vector<8x512xbf16>
    %c0_48 = arith.constant 0 : index
    %c0_49 = arith.constant 0 : index
    %c0_50 = arith.constant 0 : index
    %112 = vector.load %arg12[%c0_48, %c0_49, %c0_50] : memref<1x512x128xbf16, #tpu.memory_space<vmem>>, vector<1x512x128xbf16>
    %113 = vector.shape_cast %112 : vector<1x512x128xbf16> to vector<512x128xbf16>
    %cst_51 = arith.constant dense<0.000000e+00> : vector<8x128xf32>
    %114 = tpu.matmul %111, %113, %cst_51 {dimension_numbers = #tpu.dot_dimension_numbers<[1], [0], [0], [1], [0, 0, 1, 1], [], []>} : vector<8x512xbf16>, vector<512x128xbf16>, vector<8x128xf32> -> vector<8x128xf32>
    %c0_52 = arith.constant 0 : index
    %c0_53 = arith.constant 0 : index
    %c0_54 = arith.constant 0 : index
    %115 = vector.load %arg13[%c0_52, %c0_53, %c0_54] : memref<1x1x128xf32, #tpu.memory_space<vmem>>, vector<1x1x128xf32>
    %116 = vector.shape_cast %115 : vector<1x1x128xf32> to vector<1x128xf32>
    %117 = vector.broadcast %116 : vector<1x128xf32> to vector<8x128xf32>
    %118 = arith.addf %114, %117 : vector<8x128xf32>
    %119 = arith.addf %118, %89 : vector<8x128xf32>
    %c0_55 = arith.constant 0 : index
    %c0_56 = arith.constant 0 : index
    %c0_57 = arith.constant 0 : index
    %120 = vector.load %arg14[%c0_55, %c0_56, %c0_57] : memref<1x1x128xf32, #tpu.memory_space<vmem>>, vector<1x1x128xf32>
    %121 = vector.shape_cast %120 : vector<1x1x128xf32> to vector<1x128xf32>
    %c0_58 = arith.constant 0 : index
    %c0_59 = arith.constant 0 : index
    %c0_60 = arith.constant 0 : index
    %122 = vector.load %arg15[%c0_58, %c0_59, %c0_60] : memref<1x1x128xf32, #tpu.memory_space<vmem>>, vector<1x1x128xf32>
    %123 = vector.shape_cast %122 : vector<1x1x128xf32> to vector<1x128xf32>
    %cst_61 = arith.constant dense<0.000000e+00> : vector<8xf32>
    %124 = vector.multi_reduction <add>, %119, %cst_61 [1] : vector<8x128xf32> to vector<8xf32>
    %125 = vector.shape_cast %124 : vector<8xf32> to vector<8x1xf32>
    %cst_62 = arith.constant 1.280000e+02 : f32
    %126 = vector.broadcast %cst_62 : f32 to vector<8x1xf32>
    %127 = arith.divf %125, %126 : vector<8x1xf32>
    %128 = vector.broadcast %127 : vector<8x1xf32> to vector<8x128xf32>
    %129 = arith.subf %119, %128 : vector<8x128xf32>
    %130 = arith.mulf %129, %129 : vector<8x128xf32>
    %cst_63 = arith.constant dense<0.000000e+00> : vector<8xf32>
    %131 = vector.multi_reduction <add>, %130, %cst_63 [1] : vector<8x128xf32> to vector<8xf32>
    %132 = vector.shape_cast %131 : vector<8xf32> to vector<8x1xf32>
    %cst_64 = arith.constant 1.280000e+02 : f32
    %133 = vector.broadcast %cst_64 : f32 to vector<8x1xf32>
    %134 = arith.divf %132, %133 : vector<8x1xf32>
    %cst_65 = arith.constant 9.99999996E-13 : f32
    %135 = vector.broadcast %cst_65 : f32 to vector<8x1xf32>
    %136 = arith.addf %134, %135 : vector<8x1xf32>
    %137 = math.rsqrt %136 : vector<8x1xf32>
    %138 = vector.broadcast %137 : vector<8x1xf32> to vector<8x128xf32>
    %139 = arith.mulf %129, %138 : vector<8x128xf32>
    %140 = vector.broadcast %121 : vector<1x128xf32> to vector<8x128xf32>
    %141 = arith.mulf %139, %140 : vector<8x128xf32>
    %142 = vector.broadcast %123 : vector<1x128xf32> to vector<8x128xf32>
    %143 = arith.addf %141, %142 : vector<8x128xf32>
    %c0_66 = arith.constant 0 : index
    %c0_67 = arith.constant 0 : index
    %144 = vector.load %arg18[%c0_66, %c0_67] : memref<8x128xf32, #tpu.memory_space<vmem>>, vector<8x128xf32>
    tpu.vector_store %arg18[%c0_66, %c0_67], %143 {strides = array<i32>} : memref<8x128xf32, #tpu.memory_space<vmem>>, vector<8x128xf32>,
    %c1_i32 = arith.constant 1 : i32
    %145 = arith.cmpi eq, %arg1, %c1_i32 : i32
    %146 = arith.extui %145 : i1 to i32
    %c0_i32_68 = arith.constant 0 : i32
    %147 = arith.cmpi ne, %146, %c0_i32_68 : i32
    scf.if %147 {
      %151 = arith.truncf %143 : vector<8x128xf32> to vector<8x128xbf16>
      %c0_70 = arith.constant 0 : index
      %c0_71 = arith.constant 0 : index
      %c0_72 = arith.constant 0 : index
      %152 = vector.load %arg17[%c0_70, %c0_71, %c0_72] : memref<1x8x128xbf16, #tpu.memory_space<vmem>>, vector<1x8x128xbf16>
      %153 = vector.shape_cast %152 : vector<1x8x128xbf16> to vector<8x128xbf16>
      %154 = vector.shape_cast %151 : vector<8x128xbf16> to vector<1x8x128xbf16>
      tpu.vector_store %arg17[%c0_70, %c0_71, %c0_72], %154 {strides = array<i32>} : memref<1x8x128xbf16, #tpu.memory_space<vmem>>, vector<1x8x128xbf16>,
    } else {
    }
    %c3_i32 = arith.constant 3 : i32
    %148 = arith.cmpi eq, %arg1, %c3_i32 : i32
    %149 = arith.extui %148 : i1 to i32
    %c0_i32_69 = arith.constant 0 : i32
    %150 = arith.cmpi ne, %149, %c0_i32_69 : i32
    scf.if %150 {
      %151 = arith.truncf %143 : vector<8x128xf32> to vector<8x128xbf16>
      %c0_70 = arith.constant 0 : index
      %c0_71 = arith.constant 0 : index
      %c0_72 = arith.constant 0 : index
      %152 = vector.load %arg16[%c0_70, %c0_71, %c0_72] : memref<1x8x128xbf16, #tpu.memory_space<vmem>>, vector<1x8x128xbf16>
      %153 = vector.shape_cast %152 : vector<1x8x128xbf16> to vector<8x128xbf16>
      %154 = vector.shape_cast %151 : vector<8x128xbf16> to vector<1x8x128xbf16>
      tpu.vector_store %arg16[%c0_70, %c0_71, %c0_72], %154 {strides = array<i32>} : memref<1x8x128xbf16, #tpu.memory_space<vmem>>, vector<1x8x128xbf16>,
    } else {
    }
    return
  }
  func.func @transform_0(%arg0: i32, %arg1: i32) -> (i32, i32, i32) {
    %c0_i32 = arith.constant 0 : i32
    %c0_i32_0 = arith.constant 0 : i32
    %c0_i32_1 = arith.constant 0 : i32
    return %arg0, %c0_i32, %c0_i32_0 : i32, i32, i32
  }
  func.func @transform_1(%arg0: i32, %arg1: i32) -> (i32, i32, i32) {
    %c0_i32 = arith.constant 0 : i32
    %c0_i32_0 = arith.constant 0 : i32
    %c0_i32_1 = arith.constant 0 : i32
    return %arg0, %c0_i32, %c0_i32_0 : i32, i32, i32
  }
  func.func @transform_2(%arg0: i32, %arg1: i32) -> (i32, i32, i32) {
    %c0_i32 = arith.constant 0 : i32
    %c0_i32_0 = arith.constant 0 : i32
    %c0_i32_1 = arith.constant 0 : i32
    return %arg1, %c0_i32, %c0_i32_0 : i32, i32, i32
  }
  func.func @transform_3(%arg0: i32, %arg1: i32) -> (i32, i32, i32) {
    %c0_i32 = arith.constant 0 : i32
    %c0_i32_0 = arith.constant 0 : i32
    %c0_i32_1 = arith.constant 0 : i32
    return %arg1, %c0_i32, %c0_i32_0 : i32, i32, i32
  }
  func.func @transform_4(%arg0: i32, %arg1: i32) -> (i32, i32, i32) {
    %c0_i32 = arith.constant 0 : i32
    %c0_i32_0 = arith.constant 0 : i32
    %c0_i32_1 = arith.constant 0 : i32
    return %arg1, %c0_i32, %c0_i32_0 : i32, i32, i32
  }
  func.func @transform_5(%arg0: i32, %arg1: i32) -> (i32, i32, i32) {
    %c0_i32 = arith.constant 0 : i32
    %c0_i32_0 = arith.constant 0 : i32
    %c0_i32_1 = arith.constant 0 : i32
    return %arg1, %c0_i32, %c0_i32_0 : i32, i32, i32
  }
  func.func @transform_6(%arg0: i32, %arg1: i32) -> (i32, i32, i32) {
    %c0_i32 = arith.constant 0 : i32
    %c0_i32_0 = arith.constant 0 : i32
    %c0_i32_1 = arith.constant 0 : i32
    return %arg1, %c0_i32, %c0_i32_0 : i32, i32, i32
  }
  func.func @transform_7(%arg0: i32, %arg1: i32) -> (i32, i32, i32) {
    %c0_i32 = arith.constant 0 : i32
    %c0_i32_0 = arith.constant 0 : i32
    %c0_i32_1 = arith.constant 0 : i32
    return %arg1, %c0_i32, %c0_i32_0 : i32, i32, i32
  }
  func.func @transform_8(%arg0: i32, %arg1: i32) -> (i32, i32, i32) {
    %c0_i32 = arith.constant 0 : i32
    %c0_i32_0 = arith.constant 0 : i32
    %c0_i32_1 = arith.constant 0 : i32
    return %arg1, %c0_i32, %c0_i32_0 : i32, i32, i32
  }
  func.func @transform_9(%arg0: i32, %arg1: i32) -> (i32, i32, i32) {
    %c0_i32 = arith.constant 0 : i32
    %c0_i32_0 = arith.constant 0 : i32
    %c0_i32_1 = arith.constant 0 : i32
    return %arg1, %c0_i32, %c0_i32_0 : i32, i32, i32
  }
  func.func @transform_10(%arg0: i32, %arg1: i32) -> (i32, i32, i32) {
    %c0_i32 = arith.constant 0 : i32
    %c0_i32_0 = arith.constant 0 : i32
    %c0_i32_1 = arith.constant 0 : i32
    return %arg1, %c0_i32, %c0_i32_0 : i32, i32, i32
  }
  func.func @transform_11(%arg0: i32, %arg1: i32) -> (i32, i32, i32) {
    %c0_i32 = arith.constant 0 : i32
    %c0_i32_0 = arith.constant 0 : i32
    %c0_i32_1 = arith.constant 0 : i32
    return %arg1, %c0_i32, %c0_i32_0 : i32, i32, i32
  }
  func.func @transform_12(%arg0: i32, %arg1: i32) -> (i32, i32, i32) {
    %c0_i32 = arith.constant 0 : i32
    %c0_i32_0 = arith.constant 0 : i32
    %c0_i32_1 = arith.constant 0 : i32
    return %arg1, %c0_i32, %c0_i32_0 : i32, i32, i32
  }
  func.func @transform_13(%arg0: i32, %arg1: i32) -> (i32, i32, i32) {
    %c0_i32 = arith.constant 0 : i32
    %c0_i32_0 = arith.constant 0 : i32
    %c0_i32_1 = arith.constant 0 : i32
    return %arg1, %c0_i32, %c0_i32_0 : i32, i32, i32
  }
  func.func @transform_14(%arg0: i32, %arg1: i32) -> (i32, i32, i32) {
    %c0_i32 = arith.constant 0 : i32
    %c0_i32_0 = arith.constant 0 : i32
    %c0_i32_1 = arith.constant 0 : i32
    return %arg0, %c0_i32, %c0_i32_0 : i32, i32, i32
  }
  func.func @transform_15(%arg0: i32, %arg1: i32) -> (i32, i32, i32) {
    %c0_i32 = arith.constant 0 : i32
    %c0_i32_0 = arith.constant 0 : i32
    %c0_i32_1 = arith.constant 0 : i32
    return %arg0, %c0_i32, %c0_i32_0 : i32, i32, i32
  }
}

module attributes {stable_mosaic.version = 11 : i64} {
  func.func @_qa_head_kernel(%arg0: i32, %arg1: memref<16x128xbf16, #tpu.memory_space<vmem>>, %arg2: memref<16x128xbf16, #tpu.memory_space<vmem>>, %arg3: memref<128x256xbf16, #tpu.memory_space<vmem>>, %arg4: memref<128x256xbf16, #tpu.memory_space<vmem>>, %arg5: memref<1x256xf32, #tpu.memory_space<vmem>>, %arg6: memref<256x128xbf16, #tpu.memory_space<vmem>>, %arg7: memref<1x128xf32, #tpu.memory_space<vmem>>, %arg8: memref<16x128xf32, #tpu.memory_space<vmem>>) attributes {dimension_semantics = [#tpu.dimension_semantics<parallel>], iteration_bounds = array<i64: 1>, scalar_prefetch = 0 : i64, scratch_operands = 0 : i64, tpu.core_type = #tpu.core_type<tc>, window_params = [{transform_indices = @transform_0, window_bounds = array<i64: 16, 128>}, {transform_indices = @transform_1, window_bounds = array<i64: 16, 128>}, {pipeline_mode = #tpu.pipeline_mode<synchronous>, transform_indices = @transform_2, window_bounds = array<i64: 128, 256>}, {pipeline_mode = #tpu.pipeline_mode<synchronous>, transform_indices = @transform_3, window_bounds = array<i64: 128, 256>}, {pipeline_mode = #tpu.pipeline_mode<synchronous>, transform_indices = @transform_4, window_bounds = array<i64: 1, 256>}, {pipeline_mode = #tpu.pipeline_mode<synchronous>, transform_indices = @transform_5, window_bounds = array<i64: 256, 128>}, {pipeline_mode = #tpu.pipeline_mode<synchronous>, transform_indices = @transform_6, window_bounds = array<i64: 1, 128>}, {transform_indices = @transform_7, window_bounds = array<i64: 16, 128>}]} {
    %c0 = arith.constant 0 : index
    %c0_0 = arith.constant 0 : index
    %0 = vector.load %arg1[%c0, %c0_0] : memref<16x128xbf16, #tpu.memory_space<vmem>>, vector<16x128xbf16>
    %c0_1 = arith.constant 0 : index
    %c0_2 = arith.constant 0 : index
    %1 = vector.load %arg3[%c0_1, %c0_2] : memref<128x256xbf16, #tpu.memory_space<vmem>>, vector<128x256xbf16>
    %cst = arith.constant dense<0.000000e+00> : vector<16x256xf32>
    %2 = tpu.matmul %0, %1, %cst {dimension_numbers = #tpu.dot_dimension_numbers<[1], [0], [0], [1], [0, 0, 1, 1], [], []>} : vector<16x128xbf16>, vector<128x256xbf16>, vector<16x256xf32> -> vector<16x256xf32>
    %c0_3 = arith.constant 0 : index
    %c0_4 = arith.constant 0 : index
    %3 = vector.load %arg2[%c0_3, %c0_4] : memref<16x128xbf16, #tpu.memory_space<vmem>>, vector<16x128xbf16>
    %c0_5 = arith.constant 0 : index
    %c0_6 = arith.constant 0 : index
    %4 = vector.load %arg4[%c0_5, %c0_6] : memref<128x256xbf16, #tpu.memory_space<vmem>>, vector<128x256xbf16>
    %cst_7 = arith.constant dense<0.000000e+00> : vector<16x256xf32>
    %5 = tpu.matmul %3, %4, %cst_7 {dimension_numbers = #tpu.dot_dimension_numbers<[1], [0], [0], [1], [0, 0, 1, 1], [], []>} : vector<16x128xbf16>, vector<128x256xbf16>, vector<16x256xf32> -> vector<16x256xf32>
    %6 = arith.addf %2, %5 : vector<16x256xf32>
    %c0_8 = arith.constant 0 : index
    %c0_9 = arith.constant 0 : index
    %7 = vector.load %arg5[%c0_8, %c0_9] : memref<1x256xf32, #tpu.memory_space<vmem>>, vector<1x256xf32>
    %8 = vector.broadcast %7 : vector<1x256xf32> to vector<16x256xf32>
    %9 = arith.addf %6, %8 : vector<16x256xf32>
    %cst_10 = arith.constant 0.000000e+00 : f32
    %10 = vector.broadcast %cst_10 : f32 to vector<16x256xf32>
    %11 = arith.cmpf ogt, %9, %10 : vector<16x256xf32>
    %cst_11 = arith.constant 0.00999999977 : f32
    %12 = vector.broadcast %cst_11 : f32 to vector<16x256xf32>
    %13 = arith.mulf %12, %9 : vector<16x256xf32>
    %14 = arith.select %11, %9, %13 : vector<16x256xi1>, vector<16x256xf32>
    %15 = arith.truncf %14 : vector<16x256xf32> to vector<16x256xbf16>
    %c0_12 = arith.constant 0 : index
    %c0_13 = arith.constant 0 : index
    %16 = vector.load %arg6[%c0_12, %c0_13] : memref<256x128xbf16, #tpu.memory_space<vmem>>, vector<256x128xbf16>
    %cst_14 = arith.constant dense<0.000000e+00> : vector<16x128xf32>
    %17 = tpu.matmul %15, %16, %cst_14 {dimension_numbers = #tpu.dot_dimension_numbers<[1], [0], [0], [1], [0, 0, 1, 1], [], []>} : vector<16x256xbf16>, vector<256x128xbf16>, vector<16x128xf32> -> vector<16x128xf32>
    %c0_15 = arith.constant 0 : index
    %c0_16 = arith.constant 0 : index
    %18 = vector.load %arg7[%c0_15, %c0_16] : memref<1x128xf32, #tpu.memory_space<vmem>>, vector<1x128xf32>
    %19 = vector.broadcast %18 : vector<1x128xf32> to vector<16x128xf32>
    %20 = arith.addf %17, %19 : vector<16x128xf32>
    %c0_17 = arith.constant 0 : index
    %c0_18 = arith.constant 0 : index
    %21 = vector.load %arg8[%c0_17, %c0_18] : memref<16x128xf32, #tpu.memory_space<vmem>>, vector<16x128xf32>
    tpu.vector_store %arg8[%c0_17, %c0_18], %20 {strides = array<i32>} : memref<16x128xf32, #tpu.memory_space<vmem>>, vector<16x128xf32>,
    return
  }
  func.func @transform_0(%arg0: i32) -> (i32, i32) {
    %c0_i32 = arith.constant 0 : i32
    %c0_i32_0 = arith.constant 0 : i32
    return %arg0, %c0_i32 : i32, i32
  }
  func.func @transform_1(%arg0: i32) -> (i32, i32) {
    %c0_i32 = arith.constant 0 : i32
    %c0_i32_0 = arith.constant 0 : i32
    return %arg0, %c0_i32 : i32, i32
  }
  func.func @transform_2(%arg0: i32) -> (i32, i32) {
    %c0_i32 = arith.constant 0 : i32
    %c0_i32_0 = arith.constant 0 : i32
    %c0_i32_1 = arith.constant 0 : i32
    return %c0_i32, %c0_i32_0 : i32, i32
  }
  func.func @transform_3(%arg0: i32) -> (i32, i32) {
    %c0_i32 = arith.constant 0 : i32
    %c0_i32_0 = arith.constant 0 : i32
    %c0_i32_1 = arith.constant 0 : i32
    return %c0_i32, %c0_i32_0 : i32, i32
  }
  func.func @transform_4(%arg0: i32) -> (i32, i32) {
    %c0_i32 = arith.constant 0 : i32
    %c0_i32_0 = arith.constant 0 : i32
    %c0_i32_1 = arith.constant 0 : i32
    return %c0_i32, %c0_i32_0 : i32, i32
  }
  func.func @transform_5(%arg0: i32) -> (i32, i32) {
    %c0_i32 = arith.constant 0 : i32
    %c0_i32_0 = arith.constant 0 : i32
    %c0_i32_1 = arith.constant 0 : i32
    return %c0_i32, %c0_i32_0 : i32, i32
  }
  func.func @transform_6(%arg0: i32) -> (i32, i32) {
    %c0_i32 = arith.constant 0 : i32
    %c0_i32_0 = arith.constant 0 : i32
    %c0_i32_1 = arith.constant 0 : i32
    return %c0_i32, %c0_i32_0 : i32, i32
  }
  func.func @transform_7(%arg0: i32) -> (i32, i32) {
    %c0_i32 = arith.constant 0 : i32
    %c0_i32_0 = arith.constant 0 : i32
    return %arg0, %c0_i32 : i32, i32
  }
}

</mosaic_0001>

<bundles_post_ra>
// kernel: qa_model_forward.3
= control target key start
LH: loop header
LB: loop body
LE: loop exit
PB: predicated region body
PF: predicated region fallthrough
CT: control target
= control target key end

     0   :  { %s121_s0 = inlined_call_operand.vmem [shape: f32[16,128], index: 0, kind: input, shape index: {}]   ;;  %s122_s1 = inlined_call_operand.vmem [shape: f32[1,128], index: 1, kind: input, shape index: {}]   ;;  %s123_s2 = inlined_call_operand.vmem [shape: f32[1,128], index: 2, kind: input, shape index: {}]   ;;  %s124_s3 = inlined_call_operand.vmem [shape: bf16[16,128], index: 3, kind: output, shape index: {}]  }
   0x1   :  { %v14_v0 = vld [vmem:[%s121_s0] sm:$0xff]  ;;  %v15_v1 = vld [vmem:[%s121_s0 + $0x8] sm:$0xff] }
   0x2   :  { %18 = vadd.xlane.f32.xlu0 %v14_v0  ;;  %v71_v18 = vld [vmem:[%s122_s1] ss:$0 sm:$0xff] }
   0x3   :  { %v72_v22 = vld [vmem:[%s123_s2] ss:$0 sm:$0xff] }
   0x6   :  { %20 = vadd.xlane.f32.xlu0 %v15_v1 }
  0x8f   :  { %v19_v2 = vpop.xlane.xlu0 %18 }
  0x90   :  { %v23_v3 = vmul.f32 0.0078125, %v19_v2 }
  0x92   :  { %v25_v4 = vsub.f32 %v14_v0, %v23_v3 }
  0x93   :  { %v21_v5 = vpop.xlane.xlu0 %20 }
  0x94   :  { %v24_v6 = vmul.f32 0.0078125, %v21_v5  ;;  %v27_v7 = vmul.f32 %v25_v4, %v25_v4 }
  0x96   :  { %v26_v8 = vsub.f32 %v15_v1, %v24_v6  ;;  %29 = vadd.xlane.f32.xlu1 %v27_v7 }
  0x98   :  { %v28_v9 = vmul.f32 %v26_v8, %v26_v8 }
  0x9a   :  { %31 = vadd.xlane.f32.xlu1 %v28_v9 }
 0x123   :  { %v30_v10 = vpop.xlane.xlu1 %29 }
 0x124   :  { %v33_v11 = vmul.f32 0.0078125, %v30_v10 }
 0x126   :  { %v35_v12 = vadd.f32 1e-12, %v33_v11 }
 0x127   :  { %v32_v13 = vpop.xlane.xlu1 %31 }
 0x128   :  { %82 = vrsqrt.f32 %v35_v12  ;;  %v34_v14 = vmul.f32 0.0078125, %v32_v13 }
 0x12a   :  { %v36_v15 = vadd.f32 1e-12, %v34_v14 }
 0x12c   :  { %84 = vrsqrt.f32 %v36_v15 }
 0x132   :  { %v83_v16 = vpop.eup %82 }
 0x133   :  { %v39_v17 = vmul.f32 %v83_v16, %v25_v4 }
 0x135   :  { %v47_v20 = vmul.f32 %v71_v18, %v39_v17 }
 0x136   :  { %v85_v19 = vpop.eup %84 }
 0x137   :  { %v40_v21 = vmul.f32 %v85_v19, %v26_v8  ;;  %v55_v24 = vadd.f32 %v72_v22, %v47_v20 }
 0x139   :  { %v48_v23 = vmul.f32 %v71_v18, %v40_v21 }
 0x13b   :  { %v56_v25 = vadd.f32 %v72_v22, %v48_v23 }
 0x13d   :  { %v80_v26 = vpack.c.bf16 %v56_v25, %v55_v24 }
 0x13f   :  { %81 = vst [vmem:[%s124_s3] sm:$0xff] %v80_v26  }

// kernel: qa_model_forward.5
= control target key start
LH: loop header
LB: loop body
LE: loop exit
PB: predicated region body
PF: predicated region fallthrough
CT: control target
= control target key end

     0   :  { %v677_v1 = vmov 0   ;;  %v323_v51 = vlaneseq  ;;  %s880_s3 = inlined_call_operand.vmem [shape: bf16[128,256], index: 3, kind: input, shape index: {}]   ;;  %s881_s2 = inlined_call_operand.vmem [shape: bf16[128,256], index: 2, kind: input, shape index: {}]   ;;  %s882_s1 = inlined_call_operand.vmem [shape: bf16[16,128], index: 1, kind: input, shape index: {}]   ;;  %s883_s0 = inlined_call_operand.vmem [shape: bf16[16,128], index: 0, kind: input, shape index: {}]   ;;  %s884_s5 = inlined_call_operand.vmem [shape: bf16[256,128], index: 5, kind: input, shape index: {}]   ;;  %s885_s4 = inlined_call_operand.vmem [shape: f32[1,256], index: 4, kind: input, shape index: {}]   ;;  %s886_s6 = inlined_call_operand.vmem [shape: f32[1,128], index: 6, kind: input, shape index: {}]   ;;  %s887_s7 = inlined_call_operand.vmem [shape: f32[16,128], index: 7, kind: output, shape index: {}]  }
   0x1   :  { %v611_v0 = vld [vmem:[%s880_s3 + $0x4] ss:$8 sps:$4 sm:$0xff]   ;;  %181 = vmatprep.mubr.bf16.mxu0 %v677_v1  ;;  %v613_v2 = vld [vmem:[%s880_s3] ss:$8 sps:$4 sm:$0xff]   ;;  %v614_v3 = vld [vmem:[%s880_s3 + $0x14] ss:$8 sps:$4 sm:$0xff]  }
   0x2   :  { %149 = vmatprep.subr.bf16.mxu0 %v611_v0  ;;  %v616_v4 = vld [vmem:[%s880_s3 + $0x10] ss:$8 sps:$4 sm:$0xff]   ;;  %v617_v5 = vld [vmem:[%s880_s3 + $0x24] ss:$8 sps:$4 sm:$0xff]   ;;  %v619_v6 = vld [vmem:[%s880_s3 + $0x20] ss:$8 sps:$4 sm:$0xff]  }
   0x3   :  { %150 = vmatpush1.bf16.msra.mxu0 %v613_v2  ;;  %v620_v7 = vld [vmem:[%s880_s3 + $0x34] ss:$8 sps:$4 sm:$0xff]   ;;  %v622_v8 = vld [vmem:[%s880_s3 + $0x30] ss:$8 sps:$4 sm:$0xff]   ;;  %v623_v9 = vld [vmem:[%s880_s3 + $0x44] ss:$8 sps:$4 sm:$0xff]  }
   0x4   :  { %151 = vmatprep.subr.bf16.mxu0 %v614_v3  ;;  %v625_v10 = vld [vmem:[%s880_s3 + $0x40] ss:$8 sps:$4 sm:$0xff]   ;;  %v626_v11 = vld [vmem:[%s880_s3 + $0x54] ss:$8 sps:$4 sm:$0xff]   ;;  %v628_v12 = vld [vmem:[%s880_s3 + $0x50] ss:$8 sps:$4 sm:$0xff]  }
   0x5   :  { %v629_v13 = vld [vmem:[%s880_s3 + $0x64] ss:$8 sps:$4 sm:$0xff]   ;;  %v631_v14 = vld [vmem:[%s880_s3 + $0x60] ss:$8 sps:$4 sm:$0xff]   ;;  %v632_v15 = vld [vmem:[%s880_s3 + $0x74] ss:$8 sps:$4 sm:$0xff]  }
   0x6   :  { %v661_v16 = vld [vmem:[%s884_s5 + $0x40] sm:$0xff]   ;;  %v634_v17 = vld [vmem:[%s880_s3 + $0x70] ss:$8 sps:$4 sm:$0xff]   ;;  %v663_v20 = vld [vmem:[%s884_s5 + $0x48] sm:$0xff]   ;;  %v324_v52 = vshrl.u32 %v323_v51, 7 }
   0x7   :  { %152 = vmatpush1.bf16.msra.mxu0 %v616_v4  ;;  %v662_v18 = vld [vmem:[%s884_s5] sm:$0xff]   ;;  %584 = vmatprep.subr.bf16.mxu1 %v661_v16  ;;  %v664_v21 = vld [vmem:[%s884_s5 + $0x8] sm:$0xff]   ;;  %v665_v22 = vld [vmem:[%s884_s5 + $0x50] sm:$0xff]  }
   0x8   :  { %153 = vmatprep.subr.bf16.mxu0 %v617_v5  ;;  %v637_v19 = vld [vmem:[%s881_s2 + $0x4] ss:$8 sps:$4 sm:$0xff]   ;;  %585 = vmatpush3.bf16.msra.mxu1 %v662_v18  ;;  %v635_v23 = vld [vmem:[%s881_s2] ss:$8 sps:$4 sm:$0xff]   ;;  %v641_v25 = vld [vmem:[%s881_s2 + $0x14] ss:$8 sps:$4 sm:$0xff]  }
   0x9   :  { %586 = vmatprep.subr.bf16.mxu1 %v663_v20  ;;  %v638_v24 = vld [vmem:[%s882_s1] sm:$0xff]   ;;  %v666_v26 = vld [vmem:[%s884_s5 + $0x10] sm:$0xff]   ;;  %v667_v28 = vld [vmem:[%s884_s5 + $0x58] sm:$0xff]   ;;  %v325_v53 = vsub.s32 0, %v324_v52  ;;  %v329_v55 = vsub.s32 1, %v324_v52 }
   0xa   :  { %v639_v27 = vld [vmem:[%s881_s2 + $0x10] ss:$8 sps:$4 sm:$0xff]   ;;  %v644_v29 = vld [vmem:[%s881_s2 + $0x24] ss:$8 sps:$4 sm:$0xff]   ;;  %v642_v32 = vld [vmem:[%s881_s2 + $0x20] ss:$8 sps:$4 sm:$0xff]  }
   0xb   :  { %154 = vmatpush1.bf16.msra.mxu0 %v619_v6  ;;  %v668_v30 = vld [vmem:[%s884_s5 + $0x18] sm:$0xff]   ;;  %v669_v31 = vld [vmem:[%s884_s5 + $0x60] sm:$0xff]   ;;  %v671_v45 = vld [vmem:[%s884_s5 + $0x68] sm:$0xff]  }
   0xc   :  { %155 = vmatprep.subr.bf16.mxu0 %v620_v7  ;;  %587 = vmatpush3.bf16.msra.mxu1 %v664_v21  ;;  %v647_v33 = vld [vmem:[%s881_s2 + $0x34] ss:$8 sps:$4 sm:$0xff]   ;;  %v670_v34 = vld [vmem:[%s884_s5 + $0x20] sm:$0xff]   ;;  %v645_v35 = vld [vmem:[%s881_s2 + $0x30] ss:$8 sps:$4 sm:$0xff]  }
   0xd   :  { %588 = vmatprep.subr.bf16.mxu1 %v665_v22  ;;  %v650_v36 = vld [vmem:[%s881_s2 + $0x44] ss:$8 sps:$4 sm:$0xff]   ;;  %v648_v37 = vld [vmem:[%s881_s2 + $0x40] ss:$8 sps:$4 sm:$0xff]   ;;  %v653_v38 = vld [vmem:[%s881_s2 + $0x54] ss:$8 sps:$4 sm:$0xff]  }
   0xe   :  { %v651_v39 = vld [vmem:[%s881_s2 + $0x50] ss:$8 sps:$4 sm:$0xff]   ;;  %v656_v40 = vld [vmem:[%s881_s2 + $0x64] ss:$8 sps:$4 sm:$0xff]   ;;  %v654_v41 = vld [vmem:[%s881_s2 + $0x60] ss:$8 sps:$4 sm:$0xff]  }
   0xf   :  { %156 = vmatpush1.bf16.msra.mxu0 %v622_v8  ;;  %v659_v42 = vld [vmem:[%s881_s2 + $0x74] ss:$8 sps:$4 sm:$0xff]   ;;  %v657_v43 = vld [vmem:[%s881_s2 + $0x70] ss:$8 sps:$4 sm:$0xff]   ;;  %v660_v44 = vld [vmem:[%s883_s0] sm:$0xff]  }
  0x10   :  { %157 = vmatprep.subr.bf16.mxu0 %v623_v9  ;;  %589 = vmatpush3.bf16.msra.mxu1 %v666_v26  ;;  %v672_v46 = vld [vmem:[%s884_s5 + $0x28] sm:$0xff]   ;;  %v673_v47 = vld [vmem:[%s884_s5 + $0x70] sm:$0xff]   ;;  %v675_v49 = vld [vmem:[%s884_s5 + $0x78] sm:$0xff]  }
  0x11   :  { %590 = vmatprep.subr.bf16.mxu1 %v667_v28  ;;  %v674_v48 = vld [vmem:[%s884_s5 + $0x30] sm:$0xff]   ;;  %v676_v50 = vld [vmem:[%s884_s5 + $0x38] sm:$0xff]   ;;  %v321_v54 = vld [vmem:[%s885_s4] sm:$0x3] }
  0x12   :  { %v326_v56 = vrot.slane %v321_v54, %v325_v53  ;;  %v330_v57 = vrot.slane %v321_v54, %v329_v55 }
  0x13   :  { %158 = vmatpush1.bf16.msra.mxu0 %v625_v10 }
  0x14   :  { %159 = vmatprep.subr.bf16.mxu0 %v626_v11  ;;  %591 = vmatpush3.bf16.msra.mxu1 %v668_v30 }
  0x15   :  { %592 = vmatprep.subr.bf16.mxu1 %v669_v31 }
  0x17   :  { %160 = vmatpush1.bf16.msra.mxu0 %v628_v12 }
  0x18   :  { %161 = vmatprep.subr.bf16.mxu0 %v629_v13  ;;  %593 = vmatpush3.bf16.msra.mxu1 %v670_v34  ;;  %v567_v13 = vld [vmem:[%s886_s6] ss:$0 sm:$0xff] }
  0x19   :  { %594 = vmatprep.subr.bf16.mxu1 %v671_v45 }
  0x1b   :  { %162 = vmatpush1.bf16.msra.mxu0 %v631_v14 }
  0x1c   :  { %163 = vmatprep.subr.bf16.mxu0 %v632_v15  ;;  %595 = vmatpush3.bf16.msra.mxu1 %v672_v46 }
  0x1d   :  { %596 = vmatprep.subr.bf16.mxu1 %v673_v47 }
  0x1f   :  { %164 = vmatpush1.bf16.msra.mxu0 %v634_v17 }
  0x20   :  { %278 = vmatprep.subr.bf16.mxu0 %v637_v19  ;;  %597 = vmatpush3.bf16.msra.mxu1 %v674_v48 }
  0x21   :  { %598 = vmatprep.subr.bf16.mxu1 %v675_v49 }
  0x22   :  { %182 = vmatmul.mubr.bf16.vlgmr.msra.gmra.mrb[0].mxu0 %v638_v24 }
  0x23   :  { %279 = vmatpush1.bf16.msra.mxu0 %v635_v23  ;;  %310 = vmatprep.mubr.bf16.mxu0 %v677_v1 }
  0x24   :  { %280 = vmatprep.subr.bf16.mxu0 %v641_v25  ;;  %599 = vmatpush3.bf16.msra.mxu1 %v676_v50 }
  0x27   :  { %281 = vmatpush1.bf16.msra.mxu0 %v639_v27 }
  0x28   :  { %282 = vmatprep.subr.bf16.mxu0 %v644_v29 }
  0x2b   :  { %283 = vmatpush1.bf16.msra.mxu0 %v642_v32 }
  0x2c   :  { %284 = vmatprep.subr.bf16.mxu0 %v647_v33 }
  0x2f   :  { %285 = vmatpush1.bf16.msra.mxu0 %v645_v35 }
  0x30   :  { %286 = vmatprep.subr.bf16.mxu0 %v650_v36 }
  0x33   :  { %287 = vmatpush1.bf16.msra.mxu0 %v648_v37 }
  0x34   :  { %288 = vmatprep.subr.bf16.mxu0 %v653_v38 }
  0x37   :  { %289 = vmatpush1.bf16.msra.mxu0 %v651_v39 }
  0x38   :  { %290 = vmatprep.subr.bf16.mxu0 %v656_v40 }
  0x3b   :  { %291 = vmatpush1.bf16.msra.mxu0 %v654_v41 }
  0x3c   :  { %292 = vmatprep.subr.bf16.mxu0 %v659_v42 }
  0x3f   :  { %293 = vmatpush1.bf16.msra.mxu0 %v657_v43 }
  0x42   :  { %311 = vmatmul.mubr.bf16.vlgmr.msra.gmra.mrb[0].mxu0 %v660_v44 }
 0x115   :  { %v312_v58 = vpop.f32.mrb[0].mxu0 }
 0x116   :  { %v333_v59 = vadd.f32 %v326_v56, %v312_v58  ;;  %v314_v60 = vpop.f32.mrb[1].mxu0 }
 0x117   :  { %v334_v61 = vadd.f32 %v330_v57, %v314_v60  ;;  %v316_v62 = vpop.f32.mrb[2].mxu0 }
 0x118   :  { %v341_v63 = vmul.f32 0.01, %v333_v59  ;;  %v335_v0 = vadd.f32 %v326_v56, %v316_v62  ;;  %v318_v1 = vpop.f32.mrb[3].mxu0  ;;  %vm337_vm0 = vcmp.gt.f32.partialorder %v333_v59, 0.0 }
 0x119   :  { %v342_v2 = vmul.f32 0.01, %v334_v61  ;;  %v336_v3 = vadd.f32 %v330_v57, %v318_v1  ;;  %vm338_vm2 = vcmp.gt.f32.partialorder %v334_v61, 0.0 }
 0x11a   :  { %vm339_vm1 = vcmp.gt.f32.partialorder %v335_v0, 0.0  ;;  %v343_v4 = vmul.f32 0.01, %v335_v0  ;;  %v345_v6 = vsel %vm337_vm0, %v333_v59, %v341_v63 }
 0x11b   :  { %v344_v5 = vmul.f32 0.01, %v336_v3  ;;  %vm340_vm3 = vcmp.gt.f32.partialorder %v336_v3, 0.0  ;;  %v346_v8 = vsel %vm338_vm2, %v334_v61, %v342_v2 }
 0x11c   :  { %v347_v7 = vsel %vm339_vm1, %v335_v0, %v343_v4 }
 0x11d   :  { %v348_v9 = vsel %vm340_vm3, %v336_v3, %v344_v5  ;;  %v349_v10 = vpack.c.bf16 %v347_v7, %v345_v6 }
 0x11e   :  { %v350_v11 = vpack.c.bf16 %v348_v9, %v346_v8 }
 0x120   :  { %518 = vmatprep.mubr.bf16.mxu1 %v350_v11 }
 0x121   :  { %519 = vmatmul.mubr.bf16.vlgmr.msra.gmra.mrb[0].mxu1 %v349_v10 }
 0x1f4   :  { %v600_v12 = vpop.f32.mrb[0].mxu1 }
 0x1f5   :  { %v601_v14 = vpop.f32.mrb[1].mxu1 }
 0x1f6   :  { %v602_v15 = vadd.f32 %v601_v14, %v600_v12  ;;  %v603_v16 = vpop.f32.mrb[2].mxu1 }
 0x1f7   :  { %v604_v17 = vpop.f32.mrb[3].mxu1 }
 0x1f8   :  { %v521_v18 = vadd.f32 %v602_v15, %v567_v13  ;;  %v605_v19 = vadd.f32 %v604_v17, %v603_v16 }
 0x1fa   :  { %527 = vst [vmem:[%s887_s7] sm:$0xff] %v521_v18  ;;  %v524_v20 = vadd.f32 %v605_v19, %v567_v13 }
 0x1fc   :  { %528 = vst [vmem:[%s887_s7 + $0x8] sm:$0xff] %v524_v20 }

// kernel: qa_model_forward.4
= control target key start
LH: loop header
LB: loop body
LE: loop exit
PB: predicated region body
PF: predicated region fallthrough
CT: control target
= control target key end

     0   :  { %s3752_s0 = inlined_call_operand.vmem [shape: bf16[2,8,128], index: 0, kind: input, shape index: {}]   ;;  %s3753_s1 = inlined_call_operand.vmem [shape: f32[2,1,8], index: 1, kind: input, shape index: {}]   ;;  %s3754_s2 = inlined_call_operand.hbm [shape: bf16[4,128,384], index: 2, kind: input, shape index: {}]   ;;  %s3755_s3 = inlined_call_operand.vmem [shape: f32[4,1,384], index: 3, kind: input, shape index: {}]   ;;  %s3756_s4 = inlined_call_operand.vmem [shape: bf16[4,128,128], index: 4, kind: input, shape index: {}]   ;;  %s3757_s5 = inlined_call_operand.vmem [shape: f32[4,1,128], index: 5, kind: input, shape index: {}]   ;;  %s3758_s6 = inlined_call_operand.vmem [shape: f32[4,1,128], index: 6, kind: input, shape index: {}]   ;;  %s3759_s7 = inlined_call_operand.vmem [shape: f32[4,1,128], index: 7, kind: input, shape index: {}]   ;;  %s3760_s8 = inlined_call_operand.hbm [shape: bf16[4,128,512], index: 8, kind: input, shape index: {}]   ;;  %s3761_s9 = inlined_call_operand.vmem [shape: f32[4,1,512], index: 9, kind: input, shape index: {}]   ;;  %s3762_s10 = inlined_call_operand.hbm [shape: bf16[4,512,128], index: 10, kind: input, shape index: {}]   ;;  %s3763_s11 = inlined_call_operand.vmem [shape: f32[4,1,128], index: 11, kind: input, shape index: {}]   ;;  %s3764_s12 = inlined_call_operand.vmem [shape: f32[4,1,128], index: 12, kind: input, shape index: {}]   ;;  %s3765_s13 = inlined_call_operand.vmem [shape: f32[4,1,128], index: 13, kind: input, shape index: {}]   ;;  %s3766_s14 = inlined_call_operand.vmem [shape: bf16[2,8,128], index: 14, kind: output, shape index: {0}]   ;;  %s3767_s15 = inlined_call_operand.vmem [shape: bf16[2,8,128], index: 15, kind: output, shape index: {1}]  }
   0x1   :  { %3780 = sst [smem:[#allocation20_spill]] %s3752_s0 }
   0x2   :  { %3781 = sst [smem:[#allocation21_spill]] %s3754_s2 }
   0x3   :  { %3782 = sst [smem:[#allocation22_spill]] %s3755_s3 }
   0x4   :  { %3783 = sst [smem:[#allocation23_spill]] %s3756_s4 }
   0x5   :  { %3784 = sst [smem:[#allocation24_spill]] %s3757_s5 }
   0x6   :  { %3785 = sst [smem:[#allocation25_spill]] %s3758_s6 }
   0x7   :  { %3786 = sst [smem:[#allocation26_spill]] %s3759_s7 }
   0x8   :  { %3787 = sst [smem:[#allocation27_spill]] %s3760_s8 }
   0x9   :  { %3788 = sst [smem:[#allocation28_spill]] %s3761_s9 }
   0xa   :  { %3789 = sst [smem:[#allocation29_spill]] %s3762_s10 }
   0xb   :  { %3790 = sst [smem:[#allocation30_spill]] %s3763_s11 }
   0xc   :  { %3791 = sst [smem:[#allocation31_spill]] %s3764_s12 }
   0xd   :  { %3792 = sst [smem:[#allocation32_spill]] %s3765_s13 }
   0xe   :  { %3793 = sst [smem:[#allocation33_spill]] %s3766_s14 }
   0xf   :  { %3794 = sst [smem:[#allocation34_spill]] %s3767_s15 }
  0x10   :  { %21 = vsyncpa [#allocation4], 0 }
  0x11   :  { %23 = vsyncpa [#allocation4 + $0x1], 0 }
  0x12   :  { %24 = vsyncpa [#allocation6], 0 }
  0x13   :  { %26 = vsyncpa [#allocation6 + $0x1], 0  ;;  %s3221_s18 = smov 0   ;;  %s3223_s19 = smov 0  }
  0x14   :  { %s3225_s20 = smov 0   ;;  %s3227_s21 = smov 0  }
  0x15   :  { %s3229_s22 = smov 0   ;;  %s3231_s23 = smov 0  }
  0x16   :  { %s3233_s24 = smov 0   ;;  %s3235_s25 = smov 0  }
  0x17 LB: > { %3795 = sst [smem:[#allocation10_spill]] %s3102_s19  ;;  %s3770_s26 = sadd.s32 4294967295, %s3126_s25   ;;  %s3126_s25 = sphi %s3235_s25, %s32_s25   ;;  %s3122_s24 = sphi %s3233_s24, %s3851_s24   ;;  %s3118_s23 = sphi %s3231_s23, %s3850_s23   ;;  %s3114_s22 = sphi %s3229_s22, %s3849_s22   ;;  %s3110_s21 = sphi %s3227_s21, %s3848_s21   ;;  %s3106_s20 = sphi %s3225_s20, %s3847_s20   ;;  %s3102_s19 = sphi %s3223_s19, %s3846_s19   ;;  %s3098_s18 = sphi %s3221_s18, %s3845_s18  }
  0x18   : > { %3796 = sst [smem:[#allocation11_spill]] %s3106_s20  ;;  %s41_s27 = sadd.s32 1, %s3118_s23 }
  0x19   : > { %3797 = sst [smem:[#allocation12_spill]] %s3118_s23  ;;  %p42_p0 = scmp.ge.s32.totalorder %s41_s27, 4 }
  0x1a   : > { %3798 = sst [smem:[#allocation13_spill]] %s3122_s24  ;;  %s44_s28 = sadd.s32 1, %s3122_s24 }
  0x1b   : > { %3799 = sst [smem:[#allocation14_spill]] %s3126_s25  ;;  %s103_s29 = sadd.s32 1, %s3106_s20 }
  0x1c   : > { %p110_p1 = scmp.ne.s32.totalorder %s3106_s20, %s3102_s19  ;;  %s3853_s27 = smov (%p42_p0, %s41_s27), 0 }
  0x1d   : > { %3800 = sst [smem:[#allocation15_spill]] %s3853_s27  ;;  %s3855_s28 = smov (!%p42_p0, %s44_s28), %s3122_s24 }
  0x1e   : > { %s100_s30 = ssub.s32 %s3118_s23, %s3853_s27  ;;  %p111_p2 = scmp.eq.s32.totalorder %s3126_s25, 0 }
  0x1f   : > { %p46_p3 = scmp.ge.s32.totalorder %s3855_s28, 2  ;;  %p101_p4 = scmp.eq.s32.totalorder %s100_s30, 0 }
  0x20   : > { %p112_p5 = por %p111_p2, %p110_p1  ;;  %p116_p6 = scmp.ne.s32.totalorder %s3102_s19, %s3098_s18 }
  0x21   : > { %s3857_s28 = smov (%p46_p3, %s3855_s28), 0  ;;  %p117_p7 = scmp.eq.s32.totalorder %s3770_s26, 0 }
  0x22   : > { %3801 = sst [smem:[#allocation16_spill]] %s3857_s28  ;;  %p2751_p8 = scmp.lt.s32.totalorder %s3126_s25, 8 }
  0x23   : > { %s3275_s16 = scalar_select %p101_p4, %s3106_s20, %s103_s29  }
  0x24   : > { %s3281_s17 = sand.u32 1, %s3106_s20   ;;  %p3283_p9 = por %p117_p7, %p116_p6 }
  0x25   : > { %3802 = sst [smem:[#allocation17_spill]] %s3275_s16  ;;  %s545_s27 = sand.u32 1, %s3126_s25  }
  0x26   : > { %s3803_s24 = scalar_select %p3283_p9, 1, 0 }
  0x27   : > { %p3288_p10 = pnand %p2751_p8, %p112_p5  ;;  %s3772_s18 = sshll.u32 %s3281_s17, 8 }
  0x28   : > { %s3773_s29 = sshll.u32 %s3118_s23, 12  ;;  %s3805_s8 = sld [smem:[#allocation27_spill]] }
  0x29   : > { %s549_s20 = scalar_lea.vmem [#allocation5], %s3772_s18  ;;  %s3305_s14 = scalar_lea.sflag [#allocation6], %s545_s27 }
  0x2a   : > { %s556_s15 = sshll.u32 %s549_s20, 4  ;;  %p3311_p12 = pneg %p3288_p10  ;;  %s3303_s15 = int_to_ptr.vmem [resolvable:$true] %s556_s15 }
  0x2e   : > { %s3299_s16 = scalar_lea.hbm %s3805_s8, %s3773_s29  ;;  %s2971_s18 = scalar_lea.hbm %s3805_s8, 16384 }
  0x2f   : > { %s2966_s13 = scalar_lea.hbm %s3299_s16, 4096  ;;  %p2972_p1 = scmp.lt.u32.totalorder %s3299_s16, %s3805_s8 }
  0x30   : > { %p2967_p11 = scmp.ne.s32.totalorder %s3299_s16, %s2966_s13  ;;  %p2973_p2 = scmp.lt.u32.totalorder %s2971_s18, %s2966_s13 }
  0x31   : > { %p2975_p4 = scmp.lt.u32.totalorder %s2966_s13, %s3299_s16 }
  0x32   : > { %p2969_p13 = pnand %p3311_p12, %p2967_p11  ;;  %p2974_p3 = por %p2973_p2, %p2972_p1 }
  0x34   : > { %p2970_p0 = pneg %p2969_p13  ;;  %p2976_p5 = por %p2975_p4, %p2974_p3 }
  0x36   : > { %p2977_p6 = pnand %p2976_p5, %p2970_p0 }
  0x38   : > { %2980 = shalt.err (!%p2977_p6)
}
  0x39   : > { %s2981_s27 = scalar_lea.vmem %s3303_s15, 4096  ;;  %s3128_s26 = smov [#allocation5]  }
  0x3a   : > { %p2982_p7 = scmp.ne.s32.totalorder %s3303_s15, %s2981_s27  ;;  %s2986_s28 = sshll.u32 %s3128_s26, 4  ;;  %s2987_s28 = int_to_ptr.vmem [resolvable:$false] %s2986_s28 }
  0x3b   : > { %s2988_s29 = scalar_lea.vmem %s2987_s28, 8192  ;;  %p2989_p13 = scmp.lt.s32.totalorder %s3303_s15, %s2987_s28 }
  0x3c   : > { %p2984_p8 = pnand %p2982_p7, %p3311_p12  ;;  %p2990_p9 = scmp.lt.s32.totalorder %s2988_s29, %s2981_s27 }
  0x3e   : > { %p2985_p11 = pneg %p2984_p8  ;;  %p2991_p1 = por %p2990_p9, %p2989_p13 }
  0x40   : > { %p2992_p2 = pnand %p2991_p1, %p2985_p11 }
  0x42   : > { %2995 = shalt.err (!%p2992_p2)
}
  0x43   : > { %s3129_s13 = smov 256   ;;  %s3130_s18 = smov 16  }
  0x44   : > { %2747 = dma.hbm_to_vmem [thread:$0]  (!%p3288_p10), %s3299_s16, 4096, %s3303_s15, %s3305_s14, %s3129_s13, %s3129_s13, %s3130_s18  }
  0x45   : > { %s3807_s20 = sshll.u32 %s3118_s23, 12  ;;  %s3808_s10 = sld [smem:[#allocation29_spill]] }
  0x46   : > { %s3809_s29 = sshll.u32 %s3281_s17, 8  ;;  %p2466_p9 = scmp.ge.s32.totalorder %s3126_s25, 1 }
  0x47   : > { %s577_s8 = scalar_lea.vmem [#allocation7], %s3809_s29  ;;  %p610_p0 = scmp.lt.s32.totalorder %s3126_s25, 9 }
  0x48   : > { %s584_s9 = sshll.u32 %s577_s8, 4  ;;  %s2731_s7 = smul.u32 192, %s3281_s17  ;;  %s3344_s9 = int_to_ptr.vmem [resolvable:$true] %s584_s9 }
  0x49   : > { %p3348_p3 = pnand %p2466_p9, %p610_p0  ;;  %s2732_s15 = smul.u32 3072, %s3118_s23 }
  0x4a   : > { %s3811_s2 = sld [smem:[#allocation21_spill]]  ;;  %s495_s8 = scalar_lea.vmem [#allocation3], %s2731_s7 }
  0x4b   : > { %s3340_s28 = scalar_lea.hbm %s3808_s10, %s3807_s20  ;;  %s502_s20 = sshll.u32 %s495_s8, 4  ;;  %s3359_s20 = int_to_ptr.vmem [resolvable:$true] %s502_s20 }
  0x4c   : > { %s3810_s11 = scalar_select %p3348_p3, 1, 0 }
  0x4d   : > { %s492_s27 = scalar_lea.sflag [#allocation4], %s3281_s17 }
  0x50   : > { %s3357_s18 = scalar_lea.hbm %s3811_s2, %s2732_s15  ;;  %s3001_s16 = scalar_lea.hbm %s3811_s2, 12288 }
  0x51   : > { %s2996_s26 = scalar_lea.hbm %s3357_s18, 3072  ;;  %p3002_p7 = scmp.lt.u32.totalorder %s3357_s18, %s3811_s2 }
  0x52   : > { %p2997_p4 = scmp.ne.s32.totalorder %s3357_s18, %s2996_s26  ;;  %p3003_p8 = scmp.lt.u32.totalorder %s3001_s16, %s2996_s26 }
  0x53   : > { %p3005_p13 = scmp.lt.u32.totalorder %s2996_s26, %s3357_s18 }
  0x54   : > { %p2999_p5 = pnand %p2997_p4, %p3311_p12  ;;  %p3004_p11 = por %p3003_p8, %p3002_p7 }
  0x56   : > { %p3000_p6 = pneg %p2999_p5  ;;  %p3006_p1 = por %p3005_p13, %p3004_p11 }
  0x58   : > { %p3007_p2 = pnand %p3006_p1, %p3000_p6 }
  0x5a   : > { %3010 = shalt.err (!%p3007_p2)
}
  0x5b   : > { %s3011_s7 = scalar_lea.vmem %s3359_s20, 3072  ;;  %s3131_s23 = smov [#allocation3]  }
  0x5c   : > { %p3012_p9 = scmp.ne.s32.totalorder %s3359_s20, %s3011_s7  ;;  %s3016_s8 = sshll.u32 %s3131_s23, 4  ;;  %s3017_s8 = int_to_ptr.vmem [resolvable:$false] %s3016_s8 }
  0x5d   : > { %s3018_s29 = scalar_lea.vmem %s3017_s8, 6144  ;;  %p3019_p5 = scmp.lt.s32.totalorder %s3359_s20, %s3017_s8 }
  0x5e   : > { %p3014_p0 = pnand %p3012_p9, %p3311_p12  ;;  %p3020_p3 = scmp.lt.s32.totalorder %s3018_s29, %s3011_s7 }
  0x60   : > { %p3015_p4 = pneg %p3014_p0  ;;  %p3021_p7 = por %p3020_p3, %p3019_p5 }
  0x62   : > { %p3022_p8 = pnand %p3021_p7, %p3015_p4 }
  0x64   : > { %3025 = shalt.err (!%p3022_p8)
}
  0x65   : > { %s3132_s26 = smov 192   ;;  %s3133_s16 = smov 12  }
  0x66   : > { %2744 = dma.hbm_to_vmem [thread:$0]  (!%p3288_p10), %s3357_s18, 3072, %s3359_s20, %s492_s27, %s3132_s26, %s3132_s26, %s3133_s16  }
  0x67   : > { %s3026_s15 = scalar_lea.hbm %s3340_s28, 4096  ;;  %s3031_s23 = scalar_lea.hbm %s3808_s10, 16384 }
  0x68   : > { %p3027_p6 = scmp.ne.s32.totalorder %s3340_s28, %s3026_s15  ;;  %p3032_p13 = scmp.lt.u32.totalorder %s3340_s28, %s3808_s10 }
  0x69   : > { %p3033_p1 = scmp.lt.u32.totalorder %s3031_s23, %s3026_s15  ;;  %p3035_p9 = scmp.lt.u32.totalorder %s3026_s15, %s3340_s28 }
  0x6a   : > { %p3029_p3 = pnand %p3027_p6, %p3311_p12 }
  0x6b   : > { %p3034_p2 = por %p3033_p1, %p3032_p13 }
  0x6c   : > { %p3030_p11 = pneg %p3029_p3 }
  0x6d   : > { %p3036_p0 = por %p3035_p9, %p3034_p2 }
  0x6f   : > { %p3037_p4 = pnand %p3036_p0, %p3030_p11 }
  0x71   : > { %3040 = shalt.err (!%p3037_p4)
}
  0x72   : > { %s3041_s17 = scalar_lea.vmem %s3344_s9, 4096  ;;  %s3134_s18 = smov [#allocation7]  }
  0x73   : > { %p3042_p5 = scmp.ne.s32.totalorder %s3344_s9, %s3041_s17  ;;  %s3046_s20 = sshll.u32 %s3134_s18, 4  ;;  %s3047_s20 = int_to_ptr.vmem [resolvable:$false] %s3046_s20 }
  0x74   : > { %s3048_s27 = scalar_lea.vmem %s3047_s20, 8192  ;;  %p3049_p6 = scmp.lt.s32.totalorder %s3344_s9, %s3047_s20 }
  0x75   : > { %p3044_p7 = pnand %p3042_p5, %p3311_p12  ;;  %p3050_p3 = scmp.lt.s32.totalorder %s3048_s27, %s3041_s17 }
  0x77   : > { %p3045_p8 = pneg %p3044_p7  ;;  %p3051_p13 = por %p3050_p3, %p3049_p6 }
  0x79   : > { %p3052_p1 = pnand %p3051_p13, %p3045_p8 }
  0x7b   : > { %3055 = shalt.err (!%p3052_p1)
}
  0x7c   : > { %s3135_s26 = smov 64   ;;  %s3136_s16 = smov 4  }
  0x7d   : > { %2750 = dma.hbm_to_vmem [thread:$0]  (!%p3288_p10), %s3340_s28, 4096, %s3344_s9, %s3305_s14, %s3135_s26, %s3135_s26, %s3136_s16  }
  0x7e   : > { %p3812_p12 = scmp.ne.s32.totalorder %s3810_s11, 0 }
  0x80   : > { %614 = sbr.rel (%p3812_p12) target bundleno = 2601 (0xa29), region = 76 }
  0x87   : > { %s3410_s12 = sand.u32 1, %s3102_s19   ;;  %p3813_p11 = scmp.ne.s32.totalorder %s3803_s24, 0 }
  0x88   : > { %s2733_s15 = smul.u32 192, %s3410_s12  ;;  %s617_s13 = scalar_lea.sflag [#allocation4], %s3410_s12 }
  0x8a   : > { %s3414_s7 = scalar_lea.vmem [#allocation3], %s2733_s15 }
  0x8b   : > { %3089 = dma.done.wait (%p3813_p11), %s617_s13, 3072  }
  0x8c   : > { %3091 = vsyncadd (%p3813_p11), %s617_s13, 4294964224  ;;  %s3814_s9 = sadd.s32 4294967295, %s3126_s25   ;;  %s2467_s14 = sshll.u32 %s3410_s12, 8 }
  0x8d   : > { %s625_s11 = sand.u32 1, %s3814_s9   ;;  %s3423_s28 = scalar_lea.vmem [#allocation5], %s2467_s14 }
  0x8e   : > { %s626_s30 = scalar_lea.sflag [#allocation6], %s625_s11  ;;  %3815 = sst [smem:[#allocation18_spill]] %s3423_s28 }
  0x8f   : > { %3093 = dma.done.wait (%p3813_p11), %s626_s30, 8192  }
  0x90   : > { %3095 = vsyncadd (%p3813_p11), %s626_s30, 4294959104  ;;  %p736_p10 = scmp.lt.s32.totalorder %s3114_s22, 1  ;;  %p743_p2 = scmp.lt.s32.totalorder %s3110_s21, 3 }
  0x91   : > { %s3816_s0 = sld [smem:[#allocation20_spill]]  ;;  %s3818_s3 = sld [smem:[#allocation22_spill]] }
  0x92   : > { %s3859_s22 = smov (!%p736_p10, %s3114_s22), 1  ;;  %s3819_s4 = sld [smem:[#allocation23_spill]] }
  0x93   : > { %s3435_s23 = scalar_select %p743_p2, %s3110_s21, 3 }
  0x94   : > { %s3438_s24 = sshll.u32 %s3859_s22, 2  ;;  %s3825_s29 = sld [smem:[#allocation31_spill]] }
  0x95   : > { %s2734_s26 = smul.u32 3, %s3435_s23  ;;  %s2591_s16 = sshll.u32 %s3435_s23, 6 }
  0x96   : > { %s2472_s12 = sshll.u32 %s3435_s23, 2  ;;  %s3826_s18 = sld [smem:[#allocation32_spill]] }
  0x97   : > { %s739_s27 = scalar_lea.vmem %s3816_s0, %s3438_s24  ;;  %s3457_s30 = scalar_lea.vmem %s3818_s3, %s2734_s26 }
  0x98   : > { %s3462_s2 = scalar_lea.vmem %s3819_s4, %s2591_s16  ;;  %s3824_s3 = sld [smem:[#allocation28_spill]] }
  0x99   : > { %3820 = sst [smem:[#allocation19_spill]] %s3462_s2  ;;  %s3827_s20 = sld [smem:[#allocation33_spill]] }
  0x9a   : > { %s770_s4 = scalar_lea.vmem %s3825_s29, %s3435_s23  ;;  %s3828_s5 = sld [smem:[#allocation34_spill]] }
  0x9b   : > { %s3498_s9 = scalar_lea.vmem [#allocation7], %s2467_s14  ;;  %p2475_p9 = scmp.ne.s32.totalorder %s3110_s21, 0 }
  0x9c   : > { %s773_s6 = scalar_lea.vmem %s3826_s18, %s3435_s23  ;;  %v787_v0 = vld [vmem:[%s739_s27] sm:$0xf] (!%p2475_p9) }
  0x9d   : > { %786 = sbr.rel (%p2475_p9) target bundleno = 164 (0xa4), region = 92  ;;  %v788_v1 = vunpack.c.l.bf16 (!%p2475_p9), %v787_v0 }
  0x9e   : > { %s3480_s28 = scalar_lea.vmem %s3824_s3, %s2472_s12 }
  0x9f   : > { %s777_s25 = scalar_lea.vmem %s3827_s20, %s3438_s24  ;;  %789 = vst [vmem:[#allocation2] sm:$0xff] (!%p2475_p9), %v788_v1 }
  0xa0   : > { %s781_s15 = scalar_lea.vmem %s3828_s5, %s3438_s24 }
  0xa4 PF: > { %v2826_v2 = vld [vmem:[%s3414_s7 + $0x4] ss:$12 sps:$4 sm:$0xff]   ;;  %v2828_v3 = vld [vmem:[%s3414_s7] ss:$12 sps:$4 sm:$0xff]   ;;  %v3137_v4 = vmov 0   ;;  %v3138_v21 = vmov 0.0   ;;  %v826_v30 = vlaneseq  ;;  %s3829_s14 = scalar_lea.vmem %s3753_s1, %s3859_s22 }
  0xa5   : > { %1001 = vmatprep.mubr.bf16.mxu0 %v3137_v4  ;;  %969 = vmatprep.subr.bf16.mxu0 %v2826_v2  ;;  %v2829_v5 = vld [vmem:[%s3414_s7 + $0x1c] ss:$12 sps:$4 sm:$0xff]   ;;  %v2831_v6 = vld [vmem:[%s3414_s7 + $0x18] ss:$12 sps:$4 sm:$0xff]   ;;  %v2832_v7 = vld [vmem:[%s3414_s7 + $0x34] ss:$12 sps:$4 sm:$0xff]  }
  0xa6   : > { %970 = vmatpush1.bf16.msra.mxu0 %v2828_v3  ;;  %v2834_v8 = vld [vmem:[%s3414_s7 + $0x30] ss:$12 sps:$4 sm:$0xff]   ;;  %v2835_v9 = vld [vmem:[%s3414_s7 + $0x4c] ss:$12 sps:$4 sm:$0xff]   ;;  %v2837_v10 = vld [vmem:[%s3414_s7 + $0x48] ss:$12 sps:$4 sm:$0xff]   ;;  %2663 = vmatprep.subr.bf16.mxu1 %v3138_v21 }
  0xa7   : > { %971 = vmatprep.subr.bf16.mxu0 %v2829_v5  ;;  %v2838_v11 = vld [vmem:[%s3414_s7 + $0x64] ss:$12 sps:$4 sm:$0xff]   ;;  %v2840_v12 = vld [vmem:[%s3414_s7 + $0x60] ss:$12 sps:$4 sm:$0xff]   ;;  %v2841_v13 = vld [vmem:[%s3414_s7 + $0x7c] ss:$12 sps:$4 sm:$0xff]  }
  0xa8   : > { %v2843_v14 = vld [vmem:[%s3414_s7 + $0x78] ss:$12 sps:$4 sm:$0xff]   ;;  %v2844_v15 = vld [vmem:[%s3414_s7 + $0x94] ss:$12 sps:$4 sm:$0xff]   ;;  %v2846_v16 = vld [vmem:[%s3414_s7 + $0x90] ss:$12 sps:$4 sm:$0xff]  }
  0xa9   : > { %v2847_v17 = vld [vmem:[%s3414_s7 + $0xac] ss:$12 sps:$4 sm:$0xff]   ;;  %v2849_v18 = vld [vmem:[%s3414_s7 + $0xa8] ss:$12 sps:$4 sm:$0xff]   ;;  %vm3139_vm0 = vmmov 0   ;;  %v3546_v31 = vshrl.u32 %v826_v30, 7 }
  0xaa   : > { %972 = vmatpush1.bf16.msra.mxu0 %v2831_v6  ;;  %v3518_v19 = vld [vmem:[#allocation2] sm:$0xff]  ;;  %2679 = vmatprep.mubr.msk.bf16.mxu1 %vm3139_vm0, %v3138_v21  ;;  %v2850_v22 = vld [vmem:[%s3414_s7 + $0x8] ss:$12 sps:$4 sm:$0xff]   ;;  %v2851_v23 = vld [vmem:[%s3414_s7 + $0x20] ss:$12 sps:$4 sm:$0xff]   ;;  %vm1060_vm1 = vcmask 523264  }
  0xab   : > { %973 = vmatprep.subr.bf16.mxu0 %v2832_v7  ;;  %v791_v20 = vpack.c.bf16 %v3518_v19, %v3518_v19  ;;  %2664 = vmatpush3.bf16.msra.mxu1 %v2850_v22  ;;  %v2852_v24 = vld [vmem:[%s3414_s7 + $0x38] ss:$12 sps:$4 sm:$0xff]   ;;  %v2853_v25 = vld [vmem:[%s3414_s7 + $0x50] ss:$12 sps:$4 sm:$0xff]   ;;  %v2854_v26 = vld [vmem:[%s3414_s7 + $0x68] ss:$12 sps:$4 sm:$0xff]  }
  0xac   : > { %2665 = vmatprep.subr.bf16.mxu1 %v3138_v21  ;;  %v2855_v27 = vld [vmem:[%s3414_s7 + $0x80] ss:$12 sps:$4 sm:$0xff]   ;;  %v2856_v28 = vld [vmem:[%s3414_s7 + $0x98] ss:$12 sps:$4 sm:$0xff]   ;;  %v2857_v29 = vld [vmem:[%s3414_s7 + $0xb0] ss:$12 sps:$4 sm:$0xff]  }
  0xad   : > { %v832_v32 = vsub.s32 1, %v3546_v31  ;;  %v824_v33 = vld [vmem:[%s3457_s30] sm:$0x7]  ;;  %v828_v34 = vsub.s32 0, %v3546_v31  ;;  %s3140_s2 = smov 64   ;;  %v836_v48 = vsub.s32 2, %v3546_v31 }
  0xae   : > { %974 = vmatpush1.bf16.msra.mxu0 %v2834_v8  ;;  %vm1207_vm2 = vcmask 1043456   ;;  %v2502_v59 = vld [vmem:[%s3829_s14] ss:$0 sm:$0xff]  ;;  %vm1163_vm3 = vcmask 64512   ;;  %s3830_s22 = sld [smem:[#allocation19_spill]]  ;;  %s3831_s27 = sld [smem:[#allocation18_spill]] }
  0xaf   : > { %975 = vmatprep.subr.bf16.mxu0 %v2835_v9  ;;  %2666 = vmatpush3.bf16.msra.mxu1 %v2851_v23  ;;  %v833_v35 = vrot.slane %v824_v33, %v832_v32  ;;  %v829_v36 = vrot.slane %v824_v33, %v828_v34  ;;  %v837_v49 = vrot.slane %v824_v33, %v836_v48  ;;  %s3832_s12 = sld [smem:[#allocation24_spill]]  ;;  %s3834_s8 = sld [smem:[#allocation25_spill]] }
  0xb0   : > { %2667 = vmatprep.subr.bf16.mxu1 %v3138_v21  ;;  %s3836_s0 = sld [smem:[#allocation26_spill]]  ;;  %s3838_s20 = sld [smem:[#allocation30_spill]] }
  0xb1   : > { %p2585_p0 = scmp.ne.s32.totalorder %s3110_s21, 1 }
  0xb2   : > { %976 = vmatpush1.bf16.msra.mxu0 %v2837_v10 }
  0xb3   : > { %977 = vmatprep.subr.bf16.mxu0 %v2838_v11  ;;  %2668 = vmatpush3.bf16.msra.mxu1 %v2852_v24 }
  0xb4   : > { %2669 = vmatprep.subr.bf16.mxu1 %v3138_v21 }
  0xb5   : > { %s3833_s26 = scalar_lea.vmem %s3832_s12, %s3435_s23  ;;  %s3835_s29 = scalar_lea.vmem %s3834_s8, %s3435_s23 }
  0xb6   : > { %978 = vmatpush1.bf16.msra.mxu0 %v2840_v12  ;;  %s3837_s19 = scalar_lea.vmem %s3836_s0, %s3435_s23  ;;  %s3839_s13 = scalar_lea.vmem %s3838_s20, %s3435_s23 }
  0xb7   : > { %979 = vmatprep.subr.bf16.mxu0 %v2841_v13  ;;  %2670 = vmatpush3.bf16.msra.mxu1 %v2853_v25 }
  0xb8   : > { %2671 = vmatprep.subr.bf16.mxu1 %v3138_v21 }
  0xba   : > { %980 = vmatpush1.bf16.msra.mxu0 %v2843_v14 }
  0xbb   : > { %981 = vmatprep.subr.bf16.mxu0 %v2844_v15  ;;  %2672 = vmatpush3.bf16.msra.mxu1 %v2854_v26  ;;  %v2862_v26 = vld [vmem:[%s3830_s22 + $0x20] sm:$0xff]  }
  0xbc   : > { %2673 = vmatprep.subr.bf16.mxu1 %v3138_v21 }
  0xbe   : > { %982 = vmatpush1.bf16.msra.mxu0 %v2846_v16 }
  0xbf   : > { %983 = vmatprep.subr.bf16.mxu0 %v2847_v17  ;;  %2674 = vmatpush3.bf16.msra.mxu1 %v2855_v27  ;;  %v2863_v27 = vld [vmem:[%s3830_s22 + $0x28] sm:$0xff]  }
  0xc0   : > { %2675 = vmatprep.subr.bf16.mxu1 %v3138_v21 }
  0xc2   : > { %984 = vmatpush1.bf16.msra.mxu0 %v2849_v18 }
  0xc3   : > { %2683 = vmatprep.subr.bf16.mxu0 %v3138_v21  ;;  %2676 = vmatpush3.bf16.msra.mxu1 %v2856_v28  ;;  %v2864_v28 = vld [vmem:[%s3830_s22 + $0x30] sm:$0xff]  }
  0xc4   : > { %2677 = vmatprep.subr.bf16.mxu1 %v3138_v21 }
  0xc5   : > { %1002 = vmatmul.mubr.bf16.vlgmr.msra.gmra.mrb[0].mxu0 %v791_v20 }
  0xc6   : > { %2685 = vmatprep.mubr.msk.bf16.mxu0 %vm3139_vm0, %v3138_v21 }
  0xc7   : > { %2678 = vmatpush3.bf16.msra.mxu1 %v2857_v29 }
  0xc8   : > { %2689 = vmatprep.subr.bf16.mxu1 %v3138_v21 }
  0xca   : > { %2680 = vmatmul.mubr.bf16.vlgmr.msra.gmra.mrb[0].mxu1 %v791_v20 }
  0xcb   : > { %2691 = vmatprep.mubr.msk.bf16.mxu1 %vm3139_vm0, %v3138_v21 }
 0x198   : > { %v1003_v37 = vpop.f32.mrb[0].mxu0 }
 0x199   : > { %v1005_v38 = vpop.f32.mrb[1].mxu0  ;;  %v1004_v42 = vadd.f32 %v1003_v37, %v829_v36  ;;  %v2858_v37 = vld [vmem:[%s3830_s22] sm:$0xff]  }
 0x19a   : > { %v1006_v39 = vadd.f32 %v1005_v38, %v833_v35  ;;  %v1007_v40 = vpop.f32.mrb[2].mxu0 }
 0x19b   : > { %v1008_v41 = vpop.f32.mrb[3].mxu0  ;;  %v1050_v45 = vpack.c.bf16 %v1004_v42, %v1004_v42  ;;  %v2860_v40 = vld [vmem:[%s3830_s22 + $0x10] sm:$0xff]   ;;  %v2865_v42 = vld [vmem:[%s3830_s22 + $0x38] sm:$0xff]  }
 0x19c   : > { %v1051_v43 = vpack.c.bf16 %v1006_v39, %v1006_v39  ;;  %v2859_v39 = vld [vmem:[%s3830_s22 + $0x8] sm:$0xff]   ;;  %v2861_v41 = vld [vmem:[%s3830_s22 + $0x18] sm:$0xff]  }
 0x19d   : > { %v1044_v51 = vpop.f32.mrb[0].mxu1 }
 0x19e   : > { %v1065_v44 = vsel %vm1060_vm1, %v1051_v43, 0  ;;  %1057 = vrot.lane.b32.xlu0 %v1051_v43, %s3140_s2  ;;  %v1045_v52 = vadd.f32 %v1044_v51, %v837_v49  ;;  %v2681_v53 = vpop.f32.mrb[1].mxu1 }
 0x19f   : > { %2684 = vmatpush3.bf16.xpose.msra.mxu0 %v1065_v44  ;;  %v1047_v54 = vpop.f32.mrb[2].mxu1 }
 0x1a0   : > { %2695 = vmatprep.subr.bf16.mxu0 %v3138_v21  ;;  %v1052_v55 = vpack.c.bf16 %v1045_v52, %v1045_v52  ;;  %v2682_v56 = vpop.f32.mrb[3].mxu1 }
 0x1a2   : > { %1054 = vrot.lane.b32.xlu0 %v1050_v45, %s3140_s2  ;;  %v1209_v57 = vsel %vm1207_vm2, %v1052_v55, 0 }
 0x1a6   : > { %2686 = vmatmul.mubr.msk.bf16.vlgmr.msra.gmra.mrb[4].mxu0 %vm1060_vm1, %v1050_v45 }
 0x1a7   : > { %2697 = vmatprep.mubr.msk.bf16.mxu0 %vm3139_vm0, %v3138_v21  ;;  %2696 = vmatpush3.bf16.msra.mxu0 %v1209_v57 }
 0x1a8   : > { %2707 = vmatprep.subr.bf16.mxu0 %v3138_v21 }
 0x210   : > { %v1058_v46 = vpop.permute.xlu0 %1057 }
 0x211   : > { %v1111_v47 = vsel %vm1060_vm1, %v1058_v46, 0 }
 0x212   : > { %2690 = vmatpush3.bf16.xpose.msra.mxu1 %v1111_v47 }
 0x213   : > { %2701 = vmatprep.subr.bf16.mxu1 %v3138_v21 }
 0x214   : > { %v1055_v50 = vpop.permute.xlu0 %1054 }
 0x219   : > { %2692 = vmatmul.mubr.msk.bf16.vlgmr.msra.gmra.mrb[4].mxu1 %vm1060_vm1, %v1055_v50 }
 0x21a   : > { %2703 = vmatprep.mubr.msk.bf16.mxu1 %vm3139_vm0, %v3138_v21 }
 0x279   : > { %v1101_v58 = vpop.f32.mrb[4].mxu0 }
 0x27a   : > { %v1153_v60 = vmul.f32 0.125, %v1101_v58  ;;  %v2687_v61 = vpop.f32.mrb[5].mxu0  ;;  %v2515_v58 = vld [vmem:[%s3833_s26] ss:$0 sm:$0xff] }
 0x27b   : > { %v1104_v62 = vpop.f32.mrb[6].mxu0 }
 0x27c   : > { %v2688_v63 = vpop.f32.mrb[7].mxu0  ;;  %v1161_v0 = vadd.f32 %v2502_v59, %v1153_v60 }
 0x27e   : > { %v1164_v1 = vsel %vm1163_vm3, %v1161_v0, -inf }
 0x27f   : > { %1165 = vmax.xlane.f32.xlu1 %v1164_v1  ;;  %v2868_v1 = vld [vmem:[%s3831_s27 + $0x4] ss:$16 sps:$4 sm:$0xff]  }
 0x2ec   : > { %v1147_v2 = vpop.f32.mrb[4].mxu1 }
 0x2ed   : > { %v1154_v3 = vmul.f32 0.125, %v1147_v2  ;;  %v2693_v5 = vpop.f32.mrb[5].mxu1  ;;  %v2869_v2 = vld [vmem:[%s3831_s27 + $0x8] ss:$16 sps:$4 sm:$0xff]  }
 0x2ee   : > { %v1150_v6 = vpop.f32.mrb[6].mxu1  ;;  %v2874_v5 = vld [vmem:[%s3831_s27 + $0x24] ss:$16 sps:$4 sm:$0xff]  }
 0x2ef   : > { %v2694_v7 = vpop.f32.mrb[7].mxu1  ;;  %v1162_v8 = vadd.f32 %v2502_v59, %v1154_v3  ;;  %v2871_v3 = vld [vmem:[%s3831_s27 + $0xc] ss:$16 sps:$4 sm:$0xff]  }
 0x2f0   : > { %v2877_v6 = vld [vmem:[%s3831_s27 + $0x2c] ss:$16 sps:$4 sm:$0xff]   ;;  %v2872_v7 = vld [vmem:[%s3831_s27 + $0x20] ss:$16 sps:$4 sm:$0xff]  }
 0x2f1   : > { %v1167_v9 = vsel %vm1163_vm3, %v1162_v8, -inf }
 0x2f2   : > { %1168 = vmax.xlane.f32.xlu1 %v1167_v9  ;;  %v2880_v9 = vld [vmem:[%s3831_s27 + $0x44] ss:$16 sps:$4 sm:$0xff]  }
 0x30c   : > { %v1166_v10 = vpop.xlane.xlu1 %1165 }
 0x30d   : > { %v1170_v11 = vsub.f32 %v1161_v0, %v1166_v10  ;;  %v2866_v0 = vld [vmem:[%s3831_s27] ss:$16 sps:$4 sm:$0xff]  }
 0x30e   : > { %v2878_v10 = vld [vmem:[%s3831_s27 + $0x40] ss:$16 sps:$4 sm:$0xff]  }
 0x30f   : > { %v1172_v12 = vmul.f32 1.442695, %v1170_v11  ;;  %v2881_v11 = vld [vmem:[%s3831_s27 + $0x48] ss:$16 sps:$4 sm:$0xff]  }
 0x311   : > { %2946 = vpow2.f32 %v1172_v12 }
 0x31b   : > { %v2947_v13 = vpop.eup %2946 }
 0x31c   : > { %v1176_v14 = vsel %vm1163_vm3, %v2947_v13, 0.0 }
 0x31d   : > { %1177 = vadd.xlane.f32.xlu0 %v1176_v14 }
 0x37f   : > { %v1169_v15 = vpop.xlane.xlu1 %1168 }
 0x380   : > { %v1171_v16 = vsub.f32 %v1162_v8, %v1169_v15  ;;  %v2875_v8 = vld [vmem:[%s3831_s27 + $0x28] ss:$16 sps:$4 sm:$0xff]  }
 0x382   : > { %v1174_v17 = vmul.f32 1.442695, %v1171_v16  ;;  %v2886_v16 = vld [vmem:[%s3831_s27 + $0x64] ss:$16 sps:$4 sm:$0xff]  }
 0x384   : > { %2948 = vpow2.f32 %v1174_v17  ;;  %v2889_v17 = vld [vmem:[%s3831_s27 + $0x6c] ss:$16 sps:$4 sm:$0xff]  }
 0x38e   : > { %v2949_v18 = vpop.eup %2948 }
 0x38f   : > { %v1179_v20 = vsel %vm1163_vm3, %v2949_v18, 0.0 }
 0x390   : > { %1180 = vadd.xlane.f32.xlu1 %v1179_v20  ;;  %v2887_v20 = vld [vmem:[%s3831_s27 + $0x68] ss:$16 sps:$4 sm:$0xff]  }
 0x3a1   : > { %1253 = vrot.lane.b32.xlu1 %v1052_v55, %s3140_s2 }
 0x3aa   : > { %v1178_v22 = vpop.xlane.xlu0 %1177 }
 0x3ab   : > { %2950 = vrcp.f32 %v1178_v22  ;;  %v2892_v22 = vld [vmem:[%s3831_s27 + $0x84] ss:$16 sps:$4 sm:$0xff]  }
 0x3b5   : > { %v2951_v23 = vpop.eup %2950 }
 0x3b6   : > { %v1184_v24 = vmul.f32 %v2951_v23, %v2947_v13  ;;  %v2895_v23 = vld [vmem:[%s3831_s27 + $0x8c] ss:$16 sps:$4 sm:$0xff]  }
 0x3b8   : > { %v1186_v25 = vpack.c.bf16 %v1184_v24, %v1184_v24  ;;  %v2890_v24 = vld [vmem:[%s3831_s27 + $0x80] ss:$16 sps:$4 sm:$0xff]  }
 0x3ba   : > { %2698 = vmatmul.mubr.msk.bf16.vlgmr.msra.gmra.mrb[8].mxu0 %vm1163_vm3, %v1186_v25  ;;  %v2893_v25 = vld [vmem:[%s3831_s27 + $0x88] ss:$16 sps:$4 sm:$0xff]  }
 0x3bb   : > { %2715 = vmatprep.mubr.msk.bf16.mxu0 %vm3139_vm0, %v3138_v21  ;;  %2708 = vmatpush3.bf16.msra.mxu0 %v2862_v26  ;;  %v2898_v26 = vld [vmem:[%s3831_s27 + $0xa4] ss:$16 sps:$4 sm:$0xff]  }
 0x3bc   : > { %2709 = vmatprep.subr.bf16.mxu0 %v3138_v21 }
 0x3bf   : > { %2710 = vmatpush3.bf16.msra.mxu0 %v2863_v27  ;;  %v2901_v27 = vld [vmem:[%s3831_s27 + $0xac] ss:$16 sps:$4 sm:$0xff]  }
 0x3c0   : > { %2711 = vmatprep.subr.bf16.mxu0 %v3138_v21 }
 0x3c3   : > { %2712 = vmatpush3.bf16.msra.mxu0 %v2864_v28  ;;  %v2896_v28 = vld [vmem:[%s3831_s27 + $0xa0] ss:$16 sps:$4 sm:$0xff]  }
 0x3c4   : > { %2713 = vmatprep.subr.bf16.mxu0 %v3138_v21 }
 0x3c7   : > { %2714 = vmatpush3.bf16.msra.mxu0 %v2865_v42 }
 0x3c8   : > { %1688 = vmatprep.subr.bf16.mxu0 %v2868_v1  ;;  %v2929_v1 = vld [vmem:[%s3498_s9 + $0x98] sm:$0xff]  }
 0x41d   : > { %v1181_v29 = vpop.xlane.xlu1 %1180 }
 0x41e   : > { %2952 = vrcp.f32 %v1181_v29  ;;  %v2899_v29 = vld [vmem:[%s3831_s27 + $0xa8] ss:$16 sps:$4 sm:$0xff]  }
 0x421   : > { %v1254_v30 = vpop.permute.xlu1 %1253 }
 0x422   : > { %v1259_v33 = vsel %vm1207_vm2, %v1254_v30, 0  ;;  %v2904_v30 = vld [vmem:[%s3831_s27 + $0xc4] ss:$16 sps:$4 sm:$0xff]  }
 0x423   : > { %2702 = vmatpush3.bf16.msra.mxu1 %v1259_v33  ;;  %v2907_v33 = vld [vmem:[%s3831_s27 + $0xcc] ss:$16 sps:$4 sm:$0xff]  }
 0x424   : > { %2719 = vmatprep.subr.bf16.mxu1 %v3138_v21 }
 0x428   : > { %v2953_v35 = vpop.eup %2952 }
 0x429   : > { %v1185_v36 = vmul.f32 %v2953_v35, %v2949_v18  ;;  %v2884_v18 = vld [vmem:[%s3831_s27 + $0x60] ss:$16 sps:$4 sm:$0xff]  }
 0x42a   : > { %v2902_v35 = vld [vmem:[%s3831_s27 + $0xc0] ss:$16 sps:$4 sm:$0xff]  }
 0x42b   : > { %v1187_v38 = vpack.c.bf16 %v1185_v36, %v1185_v36  ;;  %v2905_v36 = vld [vmem:[%s3831_s27 + $0xc8] ss:$16 sps:$4 sm:$0xff]  }
 0x42d   : > { %2704 = vmatmul.mubr.msk.bf16.vlgmr.msra.gmra.mrb[8].mxu1 %vm1163_vm3, %v1187_v38  ;;  %v2908_v38 = vld [vmem:[%s3831_s27 + $0xe0] ss:$16 sps:$4 sm:$0xff]  }
 0x42e   : > { %2720 = vmatpush3.bf16.msra.mxu1 %v2858_v37  ;;  %2727 = vmatprep.mubr.msk.bf16.mxu1 %vm3139_vm0, %v3138_v21  ;;  %v2910_v37 = vld [vmem:[%s3831_s27 + $0xe4] ss:$16 sps:$4 sm:$0xff]  }
 0x42f   : > { %2721 = vmatprep.subr.bf16.mxu1 %v3138_v21 }
 0x432   : > { %2722 = vmatpush3.bf16.msra.mxu1 %v2859_v39  ;;  %v2911_v39 = vld [vmem:[%s3831_s27 + $0xe8] ss:$16 sps:$4 sm:$0xff]  }
 0x433   : > { %2723 = vmatprep.subr.bf16.mxu1 %v3138_v21 }
 0x436   : > { %2724 = vmatpush3.bf16.msra.mxu1 %v2860_v40  ;;  %v2913_v40 = vld [vmem:[%s3831_s27 + $0xec] ss:$16 sps:$4 sm:$0xff]  }
 0x437   : > { %2725 = vmatprep.subr.bf16.mxu1 %v3138_v21 }
 0x43a   : > { %2726 = vmatpush3.bf16.msra.mxu1 %v2861_v41 }
 0x43b   : > { %1729 = vmatprep.subr.bf16.mxu1 %v2871_v3  ;;  %v2931_v3 = vld [vmem:[%s3498_s9 + $0xe0] sm:$0xff]  }
 0x48d   : > { %v1245_v43 = vpop.f32.mrb[8].mxu0 }
 0x48e   : > { %v1251_v44 = vpack.c.bf16 %v1245_v43, %v1245_v43  ;;  %v2699_v45 = vpop.f32.mrb[9].mxu0 }
 0x48f   : > { %v1248_v46 = vpop.f32.mrb[10].mxu0  ;;  %v2516_v45 = vld [vmem:[%s3835_s29] ss:$0 sm:$0xff] }
 0x490   : > { %v2700_v47 = vpop.f32.mrb[11].mxu0  ;;  %2728 = vmatmul.mubr.msk.bf16.vlgmr.msra.gmra.mrb[12].mxu1 %vm1060_vm1, %v1251_v44 }
 0x491   : > { %1761 = vmatprep.mubr.bf16.mxu1 %v3137_v4  ;;  %1730 = vmatpush1.bf16.msra.mxu1 %v2869_v2  ;;  %v2517_v47 = vld [vmem:[%s3837_s19] ss:$0 sm:$0xff]  ;;  %v2930_v2 = vld [vmem:[%s3498_s9 + $0x60] sm:$0xff]  }
 0x492   : > { %1731 = vmatprep.subr.bf16.mxu1 %v2877_v6  ;;  %v2933_v6 = vld [vmem:[%s3498_s9 + $0xa0] sm:$0xff]  }
 0x495   : > { %1732 = vmatpush1.bf16.msra.mxu1 %v2875_v8  ;;  %v2935_v8 = vld [vmem:[%s3498_s9 + $0xe8] sm:$0xff]  }
 0x500   : > { %v1295_v49 = vpop.f32.mrb[8].mxu1 }
 0x501   : > { %v1301_v50 = vpack.c.bf16 %v1295_v49, %v1295_v49  ;;  %v2705_v51 = vpop.f32.mrb[9].mxu1 }
 0x502   : > { %v1298_v52 = vpop.f32.mrb[10].mxu1 }
 0x503   : > { %v2706_v53 = vpop.f32.mrb[11].mxu1  ;;  %2716 = vmatmul.mubr.msk.bf16.vlgmr.msra.gmra.mrb[12].mxu0 %vm1060_vm1, %v1301_v50  ;;  %v2914_v52 = vld [vmem:[%s3498_s9 + $0x40] sm:$0xff]  }
 0x504   : > { %1720 = vmatprep.mubr.bf16.mxu0 %v3137_v4  ;;  %1689 = vmatpush1.bf16.msra.mxu0 %v2866_v0  ;;  %v2915_v53 = vld [vmem:[%s3498_s9 + $0xc0] sm:$0xff]   ;;  %v2928_v0 = vld [vmem:[%s3498_s9 + $0x18] sm:$0xff]  }
 0x505   : > { %1690 = vmatprep.subr.bf16.mxu0 %v2874_v5  ;;  %v2932_v5 = vld [vmem:[%s3498_s9 + $0x20] sm:$0xff]  }
 0x508   : > { %1691 = vmatpush1.bf16.msra.mxu0 %v2872_v7  ;;  %v2934_v7 = vld [vmem:[%s3498_s9 + $0x68] sm:$0xff]  }
 0x509   : > { %1692 = vmatprep.subr.bf16.mxu0 %v2880_v9  ;;  %v2936_v9 = vld [vmem:[%s3498_s9 + $0x28] sm:$0xff]  }
 0x50c   : > { %1693 = vmatpush1.bf16.msra.mxu0 %v2878_v10  ;;  %v2938_v10 = vld [vmem:[%s3498_s9 + $0x70] sm:$0xff]  }
 0x50d   : > { %1694 = vmatprep.subr.bf16.mxu0 %v2886_v16  ;;  %v2944_v16 = vld [vmem:[%s3498_s9 + $0x38] sm:$0xff]  }
 0x510   : > { %1695 = vmatpush1.bf16.msra.mxu0 %v2884_v18  ;;  %v1506_v18 = vld [vmem:[%s3480_s28] sm:$0xf] }
 0x511   : > { %1696 = vmatprep.subr.bf16.mxu0 %v2892_v22  ;;  %v1511_v22 = vrot.slane %v1506_v18, %v828_v34 }
 0x514   : > { %1697 = vmatpush1.bf16.msra.mxu0 %v2890_v24  ;;  %v1515_v24 = vrot.slane %v1506_v18, %v832_v32 }
 0x515   : > { %1698 = vmatprep.subr.bf16.mxu0 %v2898_v26 }
 0x518   : > { %1699 = vmatpush1.bf16.msra.mxu0 %v2896_v28 }
 0x519   : > { %1700 = vmatprep.subr.bf16.mxu0 %v2904_v30 }
 0x51c   : > { %1701 = vmatpush1.bf16.msra.mxu0 %v2902_v35 }
 0x51d   : > { %1702 = vmatprep.subr.bf16.mxu0 %v2910_v37 }
 0x520   : > { %1703 = vmatpush1.bf16.msra.mxu0 %v2908_v38 }
 0x521   : > { %2619 = vmatprep.subr.bf16.mxu0 %v2914_v52 }
 0x563   : > { %v1430_v21 = vpop.f32.mrb[12].mxu1 }
 0x564   : > { %v2729_v54 = vpop.f32.mrb[13].mxu1 }
 0x565   : > { %v1433_v55 = vpop.f32.mrb[14].mxu1  ;;  %v2917_v54 = vld [vmem:[%s3498_s9 + $0x80] sm:$0xff]  }
 0x566   : > { %v2730_v56 = vpop.f32.mrb[15].mxu1  ;;  %v2918_v55 = vld [vmem:[%s3498_s9 + $0x48] sm:$0xff]  }
 0x567   : > { %v2919_v56 = vld [vmem:[%s3498_s9 + $0xc8] sm:$0xff]  }
 0x5d6   : > { %v1363_v57 = vpop.f32.mrb[12].mxu0 }
 0x5d7   : > { %v1431_v59 = vadd.f32 %v1430_v21, %v1363_v57  ;;  %v2717_v60 = vpop.f32.mrb[13].mxu0  ;;  %v2916_v21 = vld [vmem:[%s3498_s9] sm:$0xff]   ;;  %v2920_v57 = vld [vmem:[%s3498_s9 + $0x8] sm:$0xff]  }
 0x5d8   : > { %v1366_v61 = vpop.f32.mrb[14].mxu0  ;;  %v2923_v60 = vld [vmem:[%s3498_s9 + $0xd0] sm:$0xff]  }
 0x5d9   : > { %v1443_v62 = vadd.f32 %v2515_v58, %v1431_v59  ;;  %v2718_v4 = vpop.f32.mrb[15].mxu0  ;;  %v2921_v58 = vld [vmem:[%s3498_s9 + $0x88] sm:$0xff]   ;;  %v2922_v59 = vld [vmem:[%s3498_s9 + $0x50] sm:$0xff]  }
 0x5da   : > { %v2924_v61 = vld [vmem:[%s3498_s9 + $0x10] sm:$0xff]   ;;  %v2926_v4 = vld [vmem:[%s3498_s9 + $0x58] sm:$0xff]  }
 0x5db   : > { %v1444_v63 = vadd.f32 %v1443_v62, %v3518_v19  ;;  %v2883_v19 = vld [vmem:[%s3831_s27 + $0x4c] ss:$16 sps:$4 sm:$0xff]  }
 0x5dc   : > { %1733 = vmatprep.subr.bf16.mxu1 %v2883_v19  ;;  %v2925_v62 = vld [vmem:[%s3498_s9 + $0x90] sm:$0xff]   ;;  %v2937_v19 = vld [vmem:[%s3498_s9 + $0xa8] sm:$0xff]  }
 0x5dd   : > { %1447 = vadd.xlane.f32.xlu1 %v1444_v63  ;;  %1734 = vmatpush1.bf16.msra.mxu1 %v2881_v11  ;;  %v2939_v11 = vld [vmem:[%s3498_s9 + $0xf0] sm:$0xff]  }
 0x5de   : > { %1735 = vmatprep.subr.bf16.mxu1 %v2889_v17  ;;  %v2945_v17 = vld [vmem:[%s3498_s9 + $0xb8] sm:$0xff]  }
 0x5e1   : > { %1736 = vmatpush1.bf16.msra.mxu1 %v2887_v20  ;;  %v1522_v20 = vsub.s32 3, %v3546_v31 }
 0x5e2   : > { %1737 = vmatprep.subr.bf16.mxu1 %v2895_v23  ;;  %v1519_v23 = vrot.slane %v1506_v18, %v836_v48 }
 0x5e5   : > { %1738 = vmatpush1.bf16.msra.mxu1 %v2893_v25  ;;  %v1523_v25 = vrot.slane %v1506_v18, %v1522_v20 }
 0x5e6   : > { %1739 = vmatprep.subr.bf16.mxu1 %v2901_v27 }
 0x5e9   : > { %1740 = vmatpush1.bf16.msra.mxu1 %v2899_v29 }
 0x5ea   : > { %1741 = vmatprep.subr.bf16.mxu1 %v2907_v33 }
 0x5ed   : > { %1742 = vmatpush1.bf16.msra.mxu1 %v2905_v36 }
 0x5ee   : > { %1743 = vmatprep.subr.bf16.mxu1 %v2913_v40 }
 0x5f1   : > { %1744 = vmatpush1.bf16.msra.mxu1 %v2911_v39 }
 0x5f2   : > { %2641 = vmatprep.subr.bf16.mxu1 %v2915_v53 }
 0x66a   : > { %v1448_v12 = vpop.xlane.xlu1 %1447 }
 0x66b   : > { %v1450_v13 = vmul.f32 0.0078125, %v1448_v12  ;;  %v2940_v12 = vld [vmem:[%s3498_s9 + $0x30] sm:$0xff]  }
 0x66d   : > { %v1451_v14 = vsub.f32 %v1444_v63, %v1450_v13  ;;  %v2927_v63 = vld [vmem:[%s3498_s9 + $0xd8] sm:$0xff]   ;;  %v2941_v13 = vld [vmem:[%s3498_s9 + $0xb0] sm:$0xff]  }
 0x66f   : > { %v1452_v15 = vmul.f32 %v1451_v14, %v1451_v14 }
 0x671   : > { %1453 = vadd.xlane.f32.xlu0 %v1452_v15  ;;  %v2943_v15 = vld [vmem:[%s3498_s9 + $0xf8] sm:$0xff]  }
 0x6fe   : > { %v1454_v41 = vpop.xlane.xlu0 %1453 }
 0x6ff   : > { %v1455_v42 = vmul.f32 0.0078125, %v1454_v41 }
 0x701   : > { %v1456_v43 = vadd.f32 1e-12, %v1455_v42 }
 0x703   : > { %2954 = vrsqrt.f32 %v1456_v43 }
 0x70d   : > { %v2955_v44 = vpop.eup %2954 }
 0x70e   : > { %v1458_v46 = vmul.f32 %v2955_v44, %v1451_v14  ;;  %v2942_v14 = vld [vmem:[%s3498_s9 + $0x78] sm:$0xff]  }
 0x710   : > { %v1465_v49 = vmul.f32 %v2516_v45, %v1458_v46 }
 0x712   : > { %v3656_v50 = vadd.f32 %v2517_v47, %v1465_v49 }
 0x714   : > { %v1473_v51 = vpack.c.bf16 %v3656_v50, %v3656_v50 }
 0x716   : > { %1721 = vmatmul.mubr.bf16.vlgmr.msra.gmra.mrb[16].mxu0 %v1473_v51  ;;  %1762 = vmatmul.mubr.bf16.vlgmr.msra.gmra.mrb[16].mxu1 %v1473_v51 }
 0x717   : > { %2620 = vmatpush3.bf16.msra.mxu0 %v2916_v21  ;;  %2642 = vmatpush3.bf16.msra.mxu1 %v2917_v54 }
 0x718   : > { %2621 = vmatprep.subr.bf16.mxu0 %v2918_v55  ;;  %2643 = vmatprep.subr.bf16.mxu1 %v2919_v56 }
 0x71b   : > { %2622 = vmatpush3.bf16.msra.mxu0 %v2920_v57  ;;  %2644 = vmatpush3.bf16.msra.mxu1 %v2921_v58 }
 0x71c   : > { %2623 = vmatprep.subr.bf16.mxu0 %v2922_v59  ;;  %2645 = vmatprep.subr.bf16.mxu1 %v2923_v60 }
 0x71f   : > { %2624 = vmatpush3.bf16.msra.mxu0 %v2924_v61  ;;  %2646 = vmatpush3.bf16.msra.mxu1 %v2925_v62 }
 0x720   : > { %2625 = vmatprep.subr.bf16.mxu0 %v2926_v4  ;;  %2647 = vmatprep.subr.bf16.mxu1 %v2927_v63 }
 0x723   : > { %2626 = vmatpush3.bf16.msra.mxu0 %v2928_v0  ;;  %2648 = vmatpush3.bf16.msra.mxu1 %v2929_v1 }
 0x724   : > { %2627 = vmatprep.subr.bf16.mxu0 %v2930_v2  ;;  %2649 = vmatprep.subr.bf16.mxu1 %v2931_v3 }
 0x727   : > { %2628 = vmatpush3.bf16.msra.mxu0 %v2932_v5  ;;  %2650 = vmatpush3.bf16.msra.mxu1 %v2933_v6 }
 0x728   : > { %2629 = vmatprep.subr.bf16.mxu0 %v2934_v7  ;;  %2651 = vmatprep.subr.bf16.mxu1 %v2935_v8 }
 0x72b   : > { %2630 = vmatpush3.bf16.msra.mxu0 %v2936_v9  ;;  %2652 = vmatpush3.bf16.msra.mxu1 %v2937_v19 }
 0x72c   : > { %2631 = vmatprep.subr.bf16.mxu0 %v2938_v10  ;;  %2653 = vmatprep.subr.bf16.mxu1 %v2939_v11 }
 0x72f   : > { %2632 = vmatpush3.bf16.msra.mxu0 %v2940_v12  ;;  %2654 = vmatpush3.bf16.msra.mxu1 %v2941_v13 }
 0x730   : > { %2633 = vmatprep.subr.bf16.mxu0 %v2942_v14  ;;  %2655 = vmatprep.subr.bf16.mxu1 %v2943_v15  ;;  %v2550_v15 = vld [vmem:[%s3839_s13] ss:$0 sm:$0xff] }
 0x733   : > { %2634 = vmatpush3.bf16.msra.mxu0 %v2944_v16  ;;  %2656 = vmatpush3.bf16.msra.mxu1 %v2945_v17 }
 0x7e9   : > { %v1722_v26 = vpop.f32.mrb[16].mxu0  ;;  %v1763_v27 = vpop.f32.mrb[16].mxu1 }
 0x7ea   : > { %v1723_v28 = vadd.f32 %v1722_v26, %v1511_v22  ;;  %v1764_v29 = vadd.f32 %v1763_v27, %v1519_v23  ;;  %v1724_v30 = vpop.f32.mrb[17].mxu0  ;;  %v1765_v33 = vpop.f32.mrb[17].mxu1 }
 0x7eb   : > { %v1725_v35 = vadd.f32 %v1724_v30, %v1515_v24  ;;  %v1766_v36 = vadd.f32 %v1765_v33, %v1523_v25  ;;  %v1726_v37 = vpop.f32.mrb[18].mxu0  ;;  %v1767_v38 = vpop.f32.mrb[18].mxu1 }
 0x7ec   : > { %v1774_v39 = vmul.f32 0.044715, %v1723_v28  ;;  %v1776_v40 = vmul.f32 0.044715, %v1764_v29  ;;  %v1727_v34 = vpop.f32.mrb[19].mxu0  ;;  %v1768_v41 = vpop.f32.mrb[19].mxu1 }
 0x7ed   : > { %v1775_v42 = vmul.f32 0.044715, %v1725_v35  ;;  %v1777_v48 = vmul.f32 0.044715, %v1766_v36  ;;  %v1770_v60 = vmul.f32 0.5, %v1723_v28  ;;  %v1771_v4 = vmul.f32 0.5, %v1725_v35 }
 0x7ee   : > { %v1778_v43 = vmul.f32 %v1774_v39, %v1723_v28  ;;  %v1780_v31 = vmul.f32 %v1776_v40, %v1764_v29  ;;  %v1773_v1 = vmul.f32 0.5, %v1766_v36  ;;  %v1772_v6 = vmul.f32 0.5, %v1764_v29  ;;  %v2583_v40 = vld [vmem:[%s770_s4] ss:$0 sm:$0xff] }
 0x7ef   : > { %v1779_v32 = vmul.f32 %v1775_v42, %v1725_v35  ;;  %v1781_v44 = vmul.f32 %v1777_v48, %v1766_v36 }
 0x7f0   : > { %v1782_v45 = vmul.f32 %v1778_v43, %v1723_v28  ;;  %v1784_v46 = vmul.f32 %v1780_v31, %v1764_v29 }
 0x7f1   : > { %v1783_v47 = vmul.f32 %v1779_v32, %v1725_v35  ;;  %v1785_v49 = vmul.f32 %v1781_v44, %v1766_v36 }
 0x7f2   : > { %v1786_v51 = vadd.f32 %v1782_v45, %v1723_v28  ;;  %v1788_v52 = vadd.f32 %v1784_v46, %v1764_v29 }
 0x7f3   : > { %v1787_v53 = vadd.f32 %v1783_v47, %v1725_v35  ;;  %v1789_v21 = vadd.f32 %v1785_v49, %v1766_v36 }
 0x7f4   : > { %v1790_v54 = vmul.f32 0.7978846, %v1786_v51  ;;  %v1792_v57 = vmul.f32 0.7978846, %v1788_v52 }
 0x7f5   : > { %v1791_v55 = vmul.f32 0.7978846, %v1787_v53  ;;  %v1793_v56 = vmul.f32 0.7978846, %v1789_v21 }
 0x7f6   : > { %2956 = vtanh.f32 %v1790_v54 }
 0x7f7   : > { %2958 = vtanh.f32 %v1791_v55 }
 0x7f8   : > { %2960 = vtanh.f32 %v1793_v56 }
 0x7f9   : > { %2962 = vtanh.f32 %v1792_v57 }
 0x800   : > { %v2957_v58 = vpop.eup %2956 }
 0x801   : > { %v2959_v59 = vpop.eup %2958  ;;  %v1798_v61 = vadd.f32 1.0, %v2957_v58 }
 0x802   : > { %v2961_v62 = vpop.eup %2960  ;;  %v1799_v63 = vadd.f32 1.0, %v2959_v59 }
 0x803   : > { %v2963_v0 = vpop.eup %2962  ;;  %v1801_v2 = vadd.f32 1.0, %v2961_v62  ;;  %v1802_v3 = vmul.f32 %v1798_v61, %v1770_v60 }
 0x804   : > { %v1803_v5 = vmul.f32 %v1799_v63, %v1771_v4  ;;  %v1800_v7 = vadd.f32 1.0, %v2963_v0 }
 0x805   : > { %v1805_v8 = vmul.f32 %v1801_v2, %v1773_v1  ;;  %v1806_v11 = vpack.c.bf16 %v1802_v3, %v1802_v3 }
 0x806   : > { %v1807_v9 = vpack.c.bf16 %v1803_v5, %v1803_v5  ;;  %v1804_v19 = vmul.f32 %v1800_v7, %v1772_v6 }
 0x807   : > { %v1809_v10 = vpack.c.bf16 %v1805_v8, %v1805_v8 }
 0x808   : > { %2105 = vmatprep.mubr.bf16.mxu0 %v1807_v9  ;;  %v1808_v12 = vpack.c.bf16 %v1804_v19, %v1804_v19 }
 0x809   : > { %2145 = vmatprep.mubr.bf16.mxu1 %v1809_v10  ;;  %2106 = vmatmul.mubr.bf16.vlgmr.msra.gmra.mrb[20].mxu0 %v1806_v11 }
 0x80a   : > { %2146 = vmatmul.mubr.bf16.vlgmr.msra.gmra.mrb[20].mxu1 %v1808_v12 }
 0x8dc   : > { %v2635_v13 = vpop.f32.mrb[20].mxu0 }
 0x8dd   : > { %v2657_v14 = vpop.f32.mrb[20].mxu1  ;;  %v2636_v16 = vpop.f32.mrb[21].mxu0 }
 0x8de   : > { %v2637_v17 = vadd.f32 %v2636_v16, %v2635_v13  ;;  %v2658_v18 = vpop.f32.mrb[21].mxu1  ;;  %v2638_v20 = vpop.f32.mrb[22].mxu0 }
 0x8df   : > { %v2659_v22 = vadd.f32 %v2658_v18, %v2657_v14  ;;  %v2660_v23 = vpop.f32.mrb[22].mxu1  ;;  %v2639_v24 = vpop.f32.mrb[23].mxu0 }
 0x8e0   : > { %v2108_v25 = vadd.f32 %v2637_v17, %v2550_v15  ;;  %v2661_v26 = vpop.f32.mrb[23].mxu1 }
 0x8e2   : > { %v2148_v27 = vadd.f32 %v2659_v22, %v2108_v25 }
 0x8e4   : > { %v2153_v28 = vadd.f32 %v2148_v27, %v3656_v50  ;;  %v2584_v50 = vld [vmem:[%s773_s6] ss:$0 sm:$0xff] }
 0x8e6   : > { %2156 = vadd.xlane.f32.xlu0 %v2153_v28 }
 0x973   : > { %v2157_v29 = vpop.xlane.xlu0 %2156 }
 0x974   : > { %v2158_v30 = vmul.f32 0.0078125, %v2157_v29 }
 0x976   : > { %v2159_v33 = vsub.f32 %v2153_v28, %v2158_v30 }
 0x978   : > { %v2160_v35 = vmul.f32 %v2159_v33, %v2159_v33 }
 0x97a   : > { %2161 = vadd.xlane.f32.xlu0 %v2160_v35 }
 0xa07   : > { %v2162_v36 = vpop.xlane.xlu0 %2161 }
 0xa08   : > { %v2163_v37 = vmul.f32 0.0078125, %v2162_v36 }
 0xa0a   : > { %v2164_v38 = vadd.f32 1e-12, %v2163_v37 }
 0xa0c   : > { %2964 = vrsqrt.f32 %v2164_v38 }
 0xa16   : > { %v2965_v39 = vpop.eup %2964 }
 0xa17   : > { %v2166_v34 = vmul.f32 %v2965_v39, %v2159_v33  ;;  %2185 = sbr.rel (%p2585_p0) target bundleno = 2592 (0xa20), region = 96 }
 0xa19   : > { %v2173_v41 = vmul.f32 %v2583_v40, %v2166_v34 }
 0xa1b   : > { %v2180_v42 = vadd.f32 %v2584_v50, %v2173_v41 }
 0xa1d   : > { %2181 = vst [vmem:[#allocation2] sm:$0xff] %v2180_v42  ;;  %v2186_v48 = vpack.c.bf16 (!%p2585_p0), %v2180_v42, %v2180_v42 }
 0xa1f   : > { %2187 = vst [vmem:[%s781_s15] sm:$0xf] %v2186_v48 }
 0xa20 PF: > { %p2586_p4 = scmp.ne.s32.totalorder %s3110_s21, 3 }
 0xa21   : > { %v2192_v43 = vpack.c.bf16 (!%p2586_p4), %v2180_v42, %v2180_v42 }
 0xa22   : > { %2191 = sbr.rel (%p2586_p4) target bundleno = 2601 (0xa29), region = 100 }
 0xa23   : > { %2193 = vst [vmem:[%s777_s25] sm:$0xf] (!%p2586_p4), %v2192_v43 }
 0xa29 PF: > { %s3844_s12 = sld [smem:[#allocation14_spill]]  ;;  %s3845_s18 = sld [smem:[#allocation10_spill]] }
 0xa2a   : > { %s3846_s19 = sld [smem:[#allocation11_spill]]  ;;  %s3847_s20 = sld [smem:[#allocation17_spill]] }
 0xa2b   : > { %s3848_s21 = sld [smem:[#allocation12_spill]]  ;;  %s3849_s22 = sld [smem:[#allocation13_spill]] }
 0xa2c   : > { %s3850_s23 = sld [smem:[#allocation15_spill]]  ;;  %s3851_s24 = sld [smem:[#allocation16_spill]] }
 0xa2f   : > { %s32_s25 = sadd.s32 1, %s3844_s12  }
 0xa30   : > { %p29_p5 = scmp.ge.s32.totalorder %s32_s25, 10  }
 0xa32   :  { %31 = sbr.rel (!%p29_p5) target bundleno = 23 (0x17), region = 197 }
 0xa39   :  { %2227 = vsyncpa [#allocation4], 1 }
 0xa3a   :  { %2229 = vsyncpa [#allocation4 + $0x1], 1 }
 0xa3b   :  { %2230 = vsyncpa [#allocation6], 1 }
 0xa3c   :  { %2232 = vsyncpa [#allocation6 + $0x1], 1 }

</bundles_post_ra>
